<compile_context>
chip_gen: v7x
topology: tpu7x:2x2x1
jax: 0.10.0
libtpu: 0.0.40
codegen_flags: <defaults>
</compile_context>

<pallas_src>
import jax
import jax.numpy as jnp
from jax.experimental import pallas as pl
from jax.experimental.pallas import tpu as pltpu


# ----------------------------------------------------------------------------
# Pallas kernel: per grid step, G groups of (BE events x N nodes) = M rows each.
# Adjacency + normalization fused; features carried transposed [H, M] so the
# [M, M] adjacency is the stationary MXU operand.
# ----------------------------------------------------------------------------
def graphz_kernel(pos_ref, posT_ref, y1t_ref, w2t_ref, b1t_ref, b2t_ref,
                  w3t_ref, out_ref):
    g_count, m, _ = pos_ref.shape          # (G, M, 2): G groups of stacked events

    # Weights/biases resident in VMEM for the whole grid (constant index_maps).
    w2t = w2t_ref[...]                     # [H, H]  bf16  (W2^T)
    b1t = b1t_ref[...]                     # [H, 1]  f32
    b2t = b2t_ref[...]                     # [H, 1]  f32
    w3t = w3t_ref[...]                     # [1, H]  bf16  (W3^T, 1/N folded in)
    ones_row = jnp.ones((1, m), dtype=jnp.bfloat16)

    @pl.loop(0, g_count)
    def _(g):
        # ---- adjacency: Chebyshev distance <= 1 (self-loops included).
        # Cross-event edges are impossible: the wrapper offsets each event
        # slot's x-coordinate by > coord_span + 1, so no block-diagonal mask.
        p = pos_ref[g]                                   # [M, 2]
        pt = posT_ref[g]                                 # [2, M]
        dx = jnp.abs(p[:, 0:1] - pt[0:1, :])             # [M, M]
        dy = jnp.abs(p[:, 1:2] - pt[1:2, :])             # [M, M]
        adj_bf = jnp.where(jnp.maximum(dx, dy) <= 1.0, 1.0, 0.0
                           ).astype(jnp.bfloat16)        # [M, M] bf16 (0/1 exact)

        # ---- degree as a 1-row MXU matmul -> lane-dense [1, M]; rsqrt on EUP.
        deg = jnp.dot(ones_row, adj_bf, preferred_element_type=jnp.float32)
        dinv = jax.lax.rsqrt(jnp.maximum(deg, 1.0))      # [1, M] f32

        # D^{-1/2} A D^{-1/2} @ H is evaluated transposed with the symmetric,
        # UNNORMALIZED adjacency as the stationary MXU rhs:
        #   ((H^T * dinv) @ A) * dinv     -- only H=32 lhs rows stream.

        # ---- layer 1: ReLU(A_norm @ (X W1) + b1)   (X W1 hoisted to wrapper)
        y1t = y1t_ref[g].astype(jnp.float32)             # [H, M]
        s1 = (y1t * dinv).astype(jnp.bfloat16)
        p1 = jnp.dot(s1, adj_bf, preferred_element_type=jnp.float32)
        h1t = jnp.maximum(p1 * dinv + b1t, 0.0)          # [H, M] f32

        # ---- layer 2: ReLU(A_norm @ (H1 W2) + b2)
        m2 = jnp.dot(w2t, h1t.astype(jnp.bfloat16),
                     preferred_element_type=jnp.float32) # [H, M]
        s2 = (m2 * dinv).astype(jnp.bfloat16)
        p2 = jnp.dot(s2, adj_bf, preferred_element_type=jnp.float32)
        h2t = jnp.maximum(p2 * dinv + b2t, 0.0)          # [H, M] f32

        # ---- per-node head value (mean-pool 1/N folded into w3).  Emitted as
        # a lane-dense [1, M] row; the per-event segment-sum + b3 is done in
        # the XLA epilogue outside the kernel.
        v = jnp.dot(w3t, h2t.astype(jnp.bfloat16),
                    preferred_element_type=jnp.float32)  # [1, M]
        out_ref[pl.ds(g, 1), :] = v


# ----------------------------------------------------------------------------
# Wrapper: PyG-Data-equivalent glue + one batched pallas_call
# ----------------------------------------------------------------------------
def single_ended_ez_graph_forward(coo, x, params, *, events_per_block=8,
                                  groups_per_step=2, coord_span=8):
    """Mirrors SingleEndedEZGraph.forward for a batch of events.

    coo: int32 [B, N, >=2]  detector pixel coords (values in [0, coord_span))
    x:   float32 [B, N, 2*n_samples]  waveform samples per node
    Returns float32 [B, 1] predicted z per event.
    Use events_per_block=4 on v5e (128x128 MXU); 8 on v6e/v7x.
    """
    B, N, _ = coo.shape
    BE = events_per_block
    G = groups_per_step
    assert B % (BE * G) == 0, "batch must be a multiple of events_per_block*groups_per_step"
    NB = B // (BE * G)
    M = BE * N

    w1, b1, w2, b2, w3, b3 = params
    H = w1.shape[1]

    # --- glue: Data(x=waveforms, pos=coo[:, 0:2]) equivalent ---
    pos = coo[..., 0:2].astype(jnp.float32)                        # [B, N, 2]
    # Offset each event slot's x-coordinate so cross-event Chebyshev distance
    # is always > 1 -> block-diagonal structure is implicit (no in-kernel mask).
    offset = float(coord_span + 2)
    slot = (jnp.arange(B, dtype=jnp.int32) % BE).astype(jnp.float32) * offset
    pos = pos.at[..., 0].add(slot[:, None])

    # Hoist the tiny X @ W1 GEMM into XLA; feed bf16 (X W1)^T blocks of [H, M].
    y1 = jnp.dot(x.astype(jnp.bfloat16), w1.astype(jnp.bfloat16),
                 preferred_element_type=jnp.float32)               # [B, N, H]
    y1t = jnp.swapaxes(y1.reshape(NB, G, M, H), 2, 3).astype(jnp.bfloat16)
    posb = pos.reshape(NB, G, M, 2)                                # [NB, G, M, 2]
    posTb = jnp.swapaxes(posb, 2, 3)                               # [NB, G, 2, M]

    w2t = jnp.transpose(w2).astype(jnp.bfloat16)                   # [H, H]
    b1t = b1.reshape(H, 1).astype(jnp.float32)
    b2t = b2.reshape(H, 1).astype(jnp.float32)
    w3t = (w3 / float(N)).reshape(1, H).astype(jnp.bfloat16)       # 1/N folded

    const = lambda shape: pl.BlockSpec(shape, lambda b, _s=shape: tuple(0 for _ in _s))

    out = pl.pallas_call(
        graphz_kernel,
        out_shape=jax.ShapeDtypeStruct((NB, G, M), jnp.float32),
        grid_spec=pltpu.PrefetchScalarGridSpec(
            num_scalar_prefetch=0,
            grid=(NB,),
            in_specs=[
                pl.BlockSpec((None, G, M, 2), lambda b: (b, 0, 0, 0)),   # pos
                pl.BlockSpec((None, G, 2, M), lambda b: (b, 0, 0, 0)),   # pos^T
                pl.BlockSpec((None, G, H, M), lambda b: (b, 0, 0, 0)),   # (X W1)^T bf16
                const((H, H)),                                           # W2^T
                const((H, 1)),                                           # b1^T
                const((H, 1)),                                           # b2^T
                const((1, H)),                                           # W3^T / N
            ],
            out_specs=pl.BlockSpec((None, G, M), lambda b: (b, 0, 0)),
        ),
        compiler_params=pltpu.CompilerParams(
            dimension_semantics=("parallel",)),   # shard batch across TCs (v7x)
    )(posb, posTb, y1t, w2t, b1t, b2t, w3t)

    # Per-event readout: segment-sum the lane-dense per-node head values.
    z = out.reshape(B, N).sum(axis=1, keepdims=True) + b3.reshape(1, 1)
    return z


# ----------------------------------------------------------------------------
# Deterministic parameter init (shapes implied by the module's __init__)
# ----------------------------------------------------------------------------
def init_params(key, n_samples, hidden):
    f_in = n_samples * 2            # algorithm == 'conv' branch: nsamples * 2
    k1, k2, k3, k4, k5, k6 = jax.random.split(key, 6)
    w1 = jax.random.normal(k1, (f_in, hidden), jnp.float32) * (1.0 / jnp.sqrt(f_in))
    b1 = 0.1 * jax.random.normal(k4, (1, hidden), jnp.float32)
    w2 = jax.random.normal(k2, (hidden, hidden), jnp.float32) * (1.0 / jnp.sqrt(hidden))
    b2 = 0.1 * jax.random.normal(k5, (1, hidden), jnp.float32)
    w3 = jax.random.normal(k3, (hidden, 1), jnp.float32) * (1.0 / jnp.sqrt(hidden))
    b3 = 0.1 * jax.random.normal(k6, (1, 1), jnp.float32)
    return (w1, b1, w2, b2, w3, b3)


# ----------------------------------------------------------------------------
# Pure-JAX reference (mirrors the kernel's bf16 cast points) for a sanity check
# ----------------------------------------------------------------------------
def _reference_forward(coo, x, params):
    w1, b1, w2, b2, w3, b3 = params
    N = coo.shape[1]
    w1b = w1.astype(jnp.bfloat16)
    w2b = w2.astype(jnp.bfloat16)
    w3b = (w3 / float(N)).astype(jnp.bfloat16)

    def one_event(cp, xe):
        p = cp[:, 0:2].astype(jnp.float32)
        dx = jnp.abs(p[:, None, 0] - p[None, :, 0])
        dy = jnp.abs(p[:, None, 1] - p[None, :, 1])
        adj_bf = jnp.where(jnp.maximum(dx, dy) <= 1.0, 1.0, 0.0).astype(jnp.bfloat16)
        deg = jnp.sum(adj_bf.astype(jnp.float32), axis=0, keepdims=True)   # [1, N]
        dinv = jax.lax.rsqrt(jnp.maximum(deg, 1.0))
        dinv_col = dinv.T                                                   # [N, 1]

        y1 = jnp.dot(xe.astype(jnp.bfloat16), w1b,
                     preferred_element_type=jnp.float32).astype(jnp.bfloat16)
        s1 = (y1.astype(jnp.float32) * dinv_col).astype(jnp.bfloat16)
        p1 = jnp.dot(adj_bf, s1, preferred_element_type=jnp.float32)
        h1 = jnp.maximum(p1 * dinv_col + b1, 0.0)

        m2 = jnp.dot(h1.astype(jnp.bfloat16), w2b, preferred_element_type=jnp.float32)
        s2 = (m2 * dinv_col).astype(jnp.bfloat16)
        p2 = jnp.dot(adj_bf, s2, preferred_element_type=jnp.float32)
        h2 = jnp.maximum(p2 * dinv_col + b2, 0.0)

        v = jnp.dot(h2.astype(jnp.bfloat16), w3b, preferred_element_type=jnp.float32)
        return jnp.sum(v, axis=0) + b3.reshape(1)                           # [1]

    return jax.vmap(one_event)(coo, x)                                      # [B, 1]


if __name__ == "__main__":
    key = jax.random.PRNGKey(0)
    k_coo, k_x, k_p = jax.random.split(key, 3)

    n_events = 32         # events batched behind one pallas_call
    n_nodes = 32          # detector pixels hit per event
    n_samples = 8         # system_config.n_samples
    hidden = 32           # net_config.hparams hidden width
    grid_span = 8         # detector pixel grid is 8x8

    # data = (coo, waveforms): coo int coords on an 8x8 grid (3rd col unused),
    # waveforms [N, 2*n_samples] as node features, for each of n_events events.
    coo = jax.random.randint(k_coo, (n_events, n_nodes, 3), 0, grid_span, dtype=jnp.int32)
    x = jax.random.normal(k_x, (n_events, n_nodes, 2 * n_samples), jnp.float32)

    params = init_params(k_p, n_samples, hidden)

    z = single_ended_ez_graph_forward(coo, x, params, events_per_block=8,
                                      groups_per_step=2, coord_span=grid_span)
    jax.block_until_ready(z)
    assert z.shape == (n_events, 1) and z.dtype == jnp.float32

    ref = _reference_forward(coo, x, params)
    err = float(jnp.max(jnp.abs(z - ref)))
    assert err < 2e-2, f"mismatch vs JAX reference: {err}"
    print("KERNEL_OK")
</pallas_src>

<mosaic_0001>
module attributes {stable_mosaic.version = 11 : i64} {
  func.func @graphz_kernel(%arg0: i32, %arg1: memref<1x2x256x2xf32, #tpu.memory_space<vmem>>, %arg2: memref<1x2x2x256xf32, #tpu.memory_space<vmem>>, %arg3: memref<1x2x32x256xbf16, #tpu.memory_space<vmem>>, %arg4: memref<32x32xbf16, #tpu.memory_space<vmem>>, %arg5: memref<32x1xf32, #tpu.memory_space<vmem>>, %arg6: memref<32x1xf32, #tpu.memory_space<vmem>>, %arg7: memref<1x32xbf16, #tpu.memory_space<vmem>>, %arg8: memref<1x2x256xf32, #tpu.memory_space<vmem>>) attributes {dimension_semantics = [#tpu.dimension_semantics<parallel>], iteration_bounds = array<i64: 2>, scalar_prefetch = 0 : i64, scratch_operands = 0 : i64, tpu.core_type = #tpu.core_type<tc>, window_params = [{transform_indices = @transform_0, window_bounds = array<i64: 1, 2, 256, 2>}, {transform_indices = @transform_1, window_bounds = array<i64: 1, 2, 2, 256>}, {transform_indices = @transform_2, window_bounds = array<i64: 1, 2, 32, 256>}, {pipeline_mode = #tpu.pipeline_mode<synchronous>, transform_indices = @transform_3, window_bounds = array<i64: 32, 32>}, {pipeline_mode = #tpu.pipeline_mode<synchronous>, transform_indices = @transform_4, window_bounds = array<i64: 32, 1>}, {pipeline_mode = #tpu.pipeline_mode<synchronous>, transform_indices = @transform_5, window_bounds = array<i64: 32, 1>}, {pipeline_mode = #tpu.pipeline_mode<synchronous>, transform_indices = @transform_6, window_bounds = array<i64: 1, 32>}, {transform_indices = @transform_7, window_bounds = array<i64: 1, 2, 256>}]} {
    %c0 = arith.constant 0 : index
    %c0_0 = arith.constant 0 : index
    %0 = vector.load %arg4[%c0, %c0_0] : memref<32x32xbf16, #tpu.memory_space<vmem>>, vector<32x32xbf16>
    %c0_1 = arith.constant 0 : index
    %c0_2 = arith.constant 0 : index
    %1 = vector.load %arg5[%c0_1, %c0_2] : memref<32x1xf32, #tpu.memory_space<vmem>>, vector<32x1xf32>
    %c0_3 = arith.constant 0 : index
    %c0_4 = arith.constant 0 : index
    %2 = vector.load %arg6[%c0_3, %c0_4] : memref<32x1xf32, #tpu.memory_space<vmem>>, vector<32x1xf32>
    %c0_5 = arith.constant 0 : index
    %c0_6 = arith.constant 0 : index
    %3 = vector.load %arg7[%c0_5, %c0_6] : memref<1x32xbf16, #tpu.memory_space<vmem>>, vector<1x32xbf16>
    %cst = arith.constant 1.000000e+00 : bf16
    %4 = vector.broadcast %cst : bf16 to vector<1x256xbf16>
    %c0_i32 = arith.constant 0 : i32
    %c2_i32 = arith.constant 2 : i32
    %5 = arith.addi %c0_i32, %c2_i32 : i32
    %c1_i32 = arith.constant 1 : i32
    scf.for %arg9 = %c0_i32 to %5 step %c1_i32  : i32 {
      %c1_i32_8 = arith.constant 1 : i32
      %6 = arith.muli %arg9, %c1_i32_8 : i32
      %c0_i32_9 = arith.constant 0 : i32
      %7 = arith.addi %c0_i32_9, %6 : i32
      %c0_10 = arith.constant 0 : index
      %8 = arith.index_cast %7 : i32 to index
      %c0_11 = arith.constant 0 : index
      %c0_12 = arith.constant 0 : index
      %9 = vector.load %arg1[%c0_10, %8, %c0_11, %c0_12] : memref<1x2x256x2xf32, #tpu.memory_space<vmem>>, vector<1x1x256x2xf32>
      %10 = vector.shape_cast %9 : vector<1x1x256x2xf32> to vector<256x2xf32>
      %c0_13 = arith.constant 0 : index
      %11 = arith.index_cast %7 : i32 to index
      %c0_14 = arith.constant 0 : index
      %c0_15 = arith.constant 0 : index
      %12 = vector.load %arg2[%c0_13, %11, %c0_14, %c0_15] : memref<1x2x2x256xf32, #tpu.memory_space<vmem>>, vector<1x1x2x256xf32>
      %13 = vector.shape_cast %12 : vector<1x1x2x256xf32> to vector<2x256xf32>
      %14 = vector.extract_strided_slice %10 {offsets = [0, 0], sizes = [256, 1], strides = [1, 1]} : vector<256x2xf32> to vector<256x1xf32>
      %15 = vector.extract_strided_slice %13 {offsets = [0, 0], sizes = [1, 256], strides = [1, 1]} : vector<2x256xf32> to vector<1x256xf32>
      %16 = vector.broadcast %14 : vector<256x1xf32> to vector<256x256xf32>
      %17 = vector.broadcast %15 : vector<1x256xf32> to vector<256x256xf32>
      %18 = arith.subf %16, %17 : vector<256x256xf32>
      %19 = math.absf %18 : vector<256x256xf32>
      %20 = vector.extract_strided_slice %10 {offsets = [0, 1], sizes = [256, 1], strides = [1, 1]} : vector<256x2xf32> to vector<256x1xf32>
      %21 = vector.extract_strided_slice %13 {offsets = [1, 0], sizes = [1, 256], strides = [1, 1]} : vector<2x256xf32> to vector<1x256xf32>
      %22 = vector.broadcast %20 : vector<256x1xf32> to vector<256x256xf32>
      %23 = vector.broadcast %21 : vector<1x256xf32> to vector<256x256xf32>
      %24 = arith.subf %22, %23 : vector<256x256xf32>
      %25 = math.absf %24 : vector<256x256xf32>
      %26 = arith.maximumf %19, %25 : vector<256x256xf32>
      %cst_16 = arith.constant 1.000000e+00 : f32
      %27 = vector.broadcast %cst_16 : f32 to vector<256x256xf32>
      %28 = arith.cmpf ole, %26, %27 : vector<256x256xf32>
      %cst_17 = arith.constant 1.000000e+00 : f32
      %cst_18 = arith.constant 0.000000e+00 : f32
      %29 = vector.broadcast %cst_17 : f32 to vector<256x256xf32>
      %30 = vector.broadcast %cst_18 : f32 to vector<256x256xf32>
      %31 = arith.select %28, %29, %30 : vector<256x256xi1>, vector<256x256xf32>
      %32 = arith.truncf %31 : vector<256x256xf32> to vector<256x256xbf16>
      %cst_19 = arith.constant dense<0.000000e+00> : vector<1x256xf32>
      %33 = tpu.matmul %4, %32, %cst_19 {dimension_numbers = #tpu.dot_dimension_numbers<[1], [0], [0], [1], [0, 0, 1, 1], [], []>} : vector<1x256xbf16>, vector<256x256xbf16>, vector<1x256xf32> -> vector<1x256xf32>
      %cst_20 = arith.constant 1.000000e+00 : f32
      %34 = vector.broadcast %cst_20 : f32 to vector<1x256xf32>
      %35 = arith.maximumf %33, %34 : vector<1x256xf32>
      %36 = math.rsqrt %35 : vector<1x256xf32>
      %c0_21 = arith.constant 0 : index
      %37 = arith.index_cast %7 : i32 to index
      %c0_22 = arith.constant 0 : index
      %c0_23 = arith.constant 0 : index
      %38 = vector.load %arg3[%c0_21, %37, %c0_22, %c0_23] : memref<1x2x32x256xbf16, #tpu.memory_space<vmem>>, vector<1x1x32x256xbf16>
      %39 = vector.shape_cast %38 : vector<1x1x32x256xbf16> to vector<32x256xbf16>
      %40 = arith.extf %39 : vector<32x256xbf16> to vector<32x256xf32>
      %41 = vector.broadcast %36 : vector<1x256xf32> to vector<32x256xf32>
      %42 = arith.mulf %40, %41 : vector<32x256xf32>
      %43 = arith.truncf %42 : vector<32x256xf32> to vector<32x256xbf16>
      %cst_24 = arith.constant dense<0.000000e+00> : vector<32x256xf32>
      %44 = tpu.matmul %43, %32, %cst_24 {dimension_numbers = #tpu.dot_dimension_numbers<[1], [0], [0], [1], [0, 0, 1, 1], [], []>} : vector<32x256xbf16>, vector<256x256xbf16>, vector<32x256xf32> -> vector<32x256xf32>
      %45 = vector.broadcast %36 : vector<1x256xf32> to vector<32x256xf32>
      %46 = arith.mulf %44, %45 : vector<32x256xf32>
      %47 = vector.broadcast %1 : vector<32x1xf32> to vector<32x256xf32>
      %48 = arith.addf %46, %47 : vector<32x256xf32>
      %cst_25 = arith.constant 0.000000e+00 : f32
      %49 = vector.broadcast %cst_25 : f32 to vector<32x256xf32>
      %50 = arith.maximumf %48, %49 : vector<32x256xf32>
      %51 = arith.truncf %50 : vector<32x256xf32> to vector<32x256xbf16>
      %cst_26 = arith.constant dense<0.000000e+00> : vector<32x256xf32>
      %52 = tpu.matmul %0, %51, %cst_26 {dimension_numbers = #tpu.dot_dimension_numbers<[1], [0], [0], [1], [0, 0, 1, 1], [], []>} : vector<32x32xbf16>, vector<32x256xbf16>, vector<32x256xf32> -> vector<32x256xf32>
      %53 = vector.broadcast %36 : vector<1x256xf32> to vector<32x256xf32>
      %54 = arith.mulf %52, %53 : vector<32x256xf32>
      %55 = arith.truncf %54 : vector<32x256xf32> to vector<32x256xbf16>
      %cst_27 = arith.constant dense<0.000000e+00> : vector<32x256xf32>
      %56 = tpu.matmul %55, %32, %cst_27 {dimension_numbers = #tpu.dot_dimension_numbers<[1], [0], [0], [1], [0, 0, 1, 1], [], []>} : vector<32x256xbf16>, vector<256x256xbf16>, vector<32x256xf32> -> vector<32x256xf32>
      %57 = vector.broadcast %36 : vector<1x256xf32> to vector<32x256xf32>
      %58 = arith.mulf %56, %57 : vector<32x256xf32>
      %59 = vector.broadcast %2 : vector<32x1xf32> to vector<32x256xf32>
      %60 = arith.addf %58, %59 : vector<32x256xf32>
      %cst_28 = arith.constant 0.000000e+00 : f32
      %61 = vector.broadcast %cst_28 : f32 to vector<32x256xf32>
      %62 = arith.maximumf %60, %61 : vector<32x256xf32>
      %63 = arith.truncf %62 : vector<32x256xf32> to vector<32x256xbf16>
      %cst_29 = arith.constant dense<0.000000e+00> : vector<1x256xf32>
      %64 = tpu.matmul %3, %63, %cst_29 {dimension_numbers = #tpu.dot_dimension_numbers<[1], [0], [0], [1], [0, 0, 1, 1], [], []>} : vector<1x32xbf16>, vector<32x256xbf16>, vector<1x256xf32> -> vector<1x256xf32>
      %c0_30 = arith.constant 0 : index
      %65 = arith.index_cast %7 : i32 to index
      %c0_31 = arith.constant 0 : index
      %66 = vector.load %arg8[%c0_30, %65, %c0_31] : memref<1x2x256xf32, #tpu.memory_space<vmem>>, vector<1x1x256xf32>
      %67 = vector.shape_cast %66 : vector<1x1x256xf32> to vector<1x256xf32>
      %68 = vector.shape_cast %64 : vector<1x256xf32> to vector<1x1x256xf32>
      tpu.vector_store %arg8[%c0_30, %65, %c0_31], %68 {strides = array<i32>} : memref<1x2x256xf32, #tpu.memory_space<vmem>>, vector<1x1x256xf32>,
    }
    %c2_i32_7 = arith.constant 2 : i32
    return
  }
  func.func @transform_0(%arg0: i32) -> (i32, i32, i32, i32) {
    %c0_i32 = arith.constant 0 : i32
    %c0_i32_0 = arith.constant 0 : i32
    %c0_i32_1 = arith.constant 0 : i32
    %c0_i32_2 = arith.constant 0 : i32
    return %arg0, %c0_i32, %c0_i32_0, %c0_i32_1 : i32, i32, i32, i32
  }
  func.func @transform_1(%arg0: i32) -> (i32, i32, i32, i32) {
    %c0_i32 = arith.constant 0 : i32
    %c0_i32_0 = arith.constant 0 : i32
    %c0_i32_1 = arith.constant 0 : i32
    %c0_i32_2 = arith.constant 0 : i32
    return %arg0, %c0_i32, %c0_i32_0, %c0_i32_1 : i32, i32, i32, i32
  }
  func.func @transform_2(%arg0: i32) -> (i32, i32, i32, i32) {
    %c0_i32 = arith.constant 0 : i32
    %c0_i32_0 = arith.constant 0 : i32
    %c0_i32_1 = arith.constant 0 : i32
    %c0_i32_2 = arith.constant 0 : i32
    return %arg0, %c0_i32, %c0_i32_0, %c0_i32_1 : i32, i32, i32, i32
  }
  func.func @transform_3(%arg0: i32) -> (i32, i32) {
    %c0_i32 = arith.constant 0 : i32
    %c0_i32_0 = arith.constant 0 : i32
    %c0_i32_1 = arith.constant 0 : i32
    return %c0_i32, %c0_i32_0 : i32, i32
  }
  func.func @transform_4(%arg0: i32) -> (i32, i32) {
    %c0_i32 = arith.constant 0 : i32
    %c0_i32_0 = arith.constant 0 : i32
    %c0_i32_1 = arith.constant 0 : i32
    return %c0_i32, %c0_i32_0 : i32, i32
  }
  func.func @transform_5(%arg0: i32) -> (i32, i32) {
    %c0_i32 = arith.constant 0 : i32
    %c0_i32_0 = arith.constant 0 : i32
    %c0_i32_1 = arith.constant 0 : i32
    return %c0_i32, %c0_i32_0 : i32, i32
  }
  func.func @transform_6(%arg0: i32) -> (i32, i32) {
    %c0_i32 = arith.constant 0 : i32
    %c0_i32_0 = arith.constant 0 : i32
    %c0_i32_1 = arith.constant 0 : i32
    return %c0_i32, %c0_i32_0 : i32, i32
  }
  func.func @transform_7(%arg0: i32) -> (i32, i32, i32) {
    %c0_i32 = arith.constant 0 : i32
    %c0_i32_0 = arith.constant 0 : i32
    %c0_i32_1 = arith.constant 0 : i32
    return %arg0, %c0_i32, %c0_i32_0 : i32, i32, i32
  }
}

</mosaic_0001>

<bundles_post_ra>
// kernel: tpu_custom_call.1
= control target key start
LH: loop header
LB: loop body
LE: loop exit
PB: predicated region body
PF: predicated region fallthrough
CT: control target
= control target key end

     0   :  { %s3156_s0 = inlined_call_operand.vmem [shape: f32[2,2,256,2], index: 0, kind: input, shape index: {}]   ;;  %s3157_s1 = inlined_call_operand.vmem [shape: f32[2,2,2,256], index: 1, kind: input, shape index: {}]   ;;  %s3158_s2 = inlined_call_operand.vmem [shape: bf16[2,2,32,256], index: 2, kind: input, shape index: {}]   ;;  %s3159_s3 = inlined_call_operand.vmem [shape: bf16[32,32], index: 3, kind: input, shape index: {}]   ;;  %s3160_s4 = inlined_call_operand.vmem [shape: f32[32,1], index: 4, kind: input, shape index: {}]   ;;  %s3161_s5 = inlined_call_operand.vmem [shape: f32[32,1], index: 5, kind: input, shape index: {}]   ;;  %s3162_s6 = inlined_call_operand.vmem [shape: bf16[1,32], index: 6, kind: input, shape index: {}]   ;;  %s3163_s7 = inlined_call_operand.hbm [shape: f32[2,2,256], index: 7, kind: output, shape index: {}]  }
   0x1   :  { %3192 = sst [smem:[#allocation14_spill]] %s3159_s3 }
   0x2   :  { %3193 = sst [smem:[#allocation15_spill]] %s3160_s4 }
   0x3   :  { %12 = vsyncpa [#allocation3], 0 }
   0x4   :  { %14 = vsyncpa [#allocation3 + $0x1], 0  ;;  %s2169_s24 = smov 0   ;;  %s2171_s25 = smov 0  }
   0x5   :  { %s2173_s26 = smov 0   ;;  %s2175_s27 = smov 0  }
   0x6 LB: > { %s2190_s28 = sadd.s32 4294967295, %s2117_s27   ;;  %s1732_s29 = sadd.s32 4294967294, %s2117_s27   ;;  %s2117_s27 = sphi %s2175_s27, %s3316_s27   ;;  %s2113_s26 = sphi %s2173_s26, %s3315_s26   ;;  %s2109_s25 = sphi %s2171_s25, %s3314_s25   ;;  %s2105_s24 = sphi %s2169_s24, %s3313_s24  }
   0x7   : > { %s2194_s30 = sadd.s32 1, %s2117_s27   ;;  %s189_s8 = sadd.s32 1, %s2113_s26 }
   0x8   : > { %s186_s9 = ssub.s32 %s2117_s27, %s2194_s30  ;;  %p199_p0 = scmp.ne.s32.totalorder %s2113_s26, %s2109_s25 }
   0x9   : > { %p187_p1 = scmp.eq.s32.totalorder %s186_s9, 0  ;;  %p200_p2 = scmp.eq.s32.totalorder %s2190_s28, 1 }
   0xa   : > { %p205_p3 = scmp.ne.s32.totalorder %s2109_s25, %s2105_s24  ;;  %p206_p4 = scmp.eq.s32.totalorder %s1732_s29, 1 }
   0xb   : > { %s2205_s10 = scalar_select %p187_p1, %s2113_s26, %s189_s8  }
   0xc   : > { %p2207_p5 = por %p200_p2, %p199_p0  ;;  %p2211_p6 = por %p206_p4, %p205_p3 }
   0xd   : > { %p1735_p7 = scmp.ge.s32.totalorder %s2117_s27, 1  ;;  %p260_p8 = scmp.lt.s32.totalorder %s2117_s27, 3 }
   0xf   : > { %p261_p9 = pnand %p1735_p7, %p260_p8 }
  0x11   : > { %264 = sbr.rel (%p261_p9) target bundleno = 1516 (0x5ec), region = 48 }
  0x18   : > { %s3164_s13 = sand.u32 1, %s2109_s25   ;;  %p302_p10 = scmp.lt.s32.totalorder %s2190_s28, 1  ;;  %v2267_v8 = vld [vmem:[%s3161_s5] sm:$0xff]  ;;  %v2272_v9 = vld [vmem:[%s3161_s5 + $0x8] sm:$0xff]  ;;  %v2277_v10 = vld [vmem:[%s3161_s5 + $0x10] sm:$0xff] }
  0x19   : > { %s3196_s3 = sld [smem:[#allocation14_spill]]  ;;  %s2231_s18 = sshll.u32 %s3164_s13, 2  ;;  %3202 = vst [vmem:[#allocation9_spill] sm:$0xff] %v2267_v8  ;;  %3203 = vst [vmem:[#allocation10_spill] sm:$0xff] %v2272_v9  ;;  %v2282_v11 = vld [vmem:[%s3161_s5 + $0x18] sm:$0xff] }
  0x1a   : > { %s3197_s4 = sld [smem:[#allocation15_spill]]  ;;  %3204 = vst [vmem:[#allocation11_spill] sm:$0xff] %v2277_v10  ;;  %3205 = vst [vmem:[#allocation12_spill] sm:$0xff] %v2282_v11  ;;  %v2287_v12 = vld [vmem:[%s3162_s6] sm:$0x1]  ;;  %s301_s15 = scalar_lea.vmem [#allocation2], %s2231_s18 }
  0x1b   : > { %s303_s19 = scalar_select %p302_p10, %s2190_s28, 1 }
  0x1c   : > { %s2305_s16 = smov 0  }
  0x1d   : > { %s1952_s17 = sshll.u32 %s303_s19, 9  ;;  %s1953_s20 = sshll.u32 %s303_s19, 3 }
  0x1e   : > { %s2292_s23 = scalar_lea.vmem %s3156_s0, %s1952_s17  ;;  %s2297_s13 = scalar_lea.vmem %s3157_s1, %s1953_s20 }
  0x1f   : > { %v2222_v0 = vld [vmem:[%s3196_s3] sm:$0xf]  ;;  %v2227_v1 = vld [vmem:[%s3196_s3 + $0x4] sm:$0xf]  ;;  %v2236_v2 = vld [vmem:[%s3196_s3 + $0x8] sm:$0xf] }
  0x20   : > { %v2241_v3 = vld [vmem:[%s3196_s3 + $0xc] sm:$0xf]  ;;  %v2246_v4 = vld [vmem:[%s3197_s4] sm:$0xff]  ;;  %v2256_v6 = vld [vmem:[%s3197_s4 + $0x10] sm:$0xff]  ;;  %s1954_s9 = sshll.u32 %s303_s19, 6 }
  0x21   : > { %3198 = vst [vmem:[#allocation5_spill] sm:$0xff] %v2246_v4  ;;  %v2251_v5 = vld [vmem:[%s3197_s4 + $0x8] sm:$0xff]  ;;  %3200 = vst [vmem:[#allocation7_spill] sm:$0xff] %v2256_v6  ;;  %v2261_v7 = vld [vmem:[%s3197_s4 + $0x18] sm:$0xff]  ;;  %s2302_s4 = scalar_lea.vmem %s3158_s2, %s1954_s9 }
  0x22   : > { %3199 = vst [vmem:[#allocation6_spill] sm:$0xff] %v2251_v5  ;;  %3201 = vst [vmem:[#allocation8_spill] sm:$0xff] %v2261_v7 }
  0x23 LB: >> { %v2123_v13 = vmov 1   ;;  %s1743_s19 = sshll.u32 %s2121_s16, 8  ;;  %v3174_v20 = vmov 0   ;;  %v3207_v8 = vld [vmem:[#allocation9_spill] sm:$0xff]  ;;  %v3208_v10 = vld [vmem:[#allocation11_spill] sm:$0xff]  ;;  %v3173_v47 = vlaneseq  ;;  %s1955_s3 = sshll.u32 %s2121_s16, 2  ;;  %s2121_s16 = sphi %s2305_s16, %s337_s16  }
  0x24   : >> { %2013 = vset.pattern.permute.xlu0 %v2123_v13  ;;  %2011 = vset.pattern.permute.xlu1 %v2123_v13  ;;  %s2314_s17 = scalar_lea.vmem %s2292_s23, %s1743_s19  ;;  %s374_s20 = scalar_lea.vmem %s2297_s13, %s1955_s3  ;;  %v3245_v9 = vld [vmem:[#allocation10_spill] sm:$0xff]  ;;  %v3246_v11 = vld [vmem:[#allocation12_spill] sm:$0xff] }
  0x25   : >> { %v342_v14 = vld [vmem:[%s2314_s17 + $0x10] sm:$0xff]  ;;  %v340_v15 = vld [vmem:[%s2314_s17] sm:$0xff]  ;;  %v341_v17 = vld [vmem:[%s2314_s17 + $0x8] sm:$0xff]  ;;  %v2388_v49 = vshrl.u32 %v3173_v47, 7  ;;  %s1956_s21 = sshll.u32 %s2121_s16, 5  ;;  %s1611_s29 = sshra.s32 %s2121_s16, 1 }
  0x26   : >> { %692 = vperm.xlu0 %2013, %v342_v14   ;;  %684 = vperm.xlu1 %2011, %v340_v15   ;;  %v346_v16 = vld [vmem:[%s2314_s17 + $0x30] sm:$0xff]  ;;  %v343_v19 = vld [vmem:[%s2314_s17 + $0x18] sm:$0xff]  ;;  %v344_v23 = vld [vmem:[%s2314_s17 + $0x20] sm:$0xff]  ;;  %s1228_s22 = scalar_lea.vmem %s2302_s4, %s1956_s21  ;;  %s1614_s8 = sand.u32 1, %s2121_s16 }
  0x27   : >> { %v350_v18 = vld [vmem:[%s2314_s17 + $0x50] sm:$0xff]  ;;  %v345_v26 = vld [vmem:[%s2314_s17 + $0x28] sm:$0xff]  ;;  %v347_v27 = vld [vmem:[%s2314_s17 + $0x38] sm:$0xff]  ;;  %3209 = vst [vmem:[#allocation13_spill] sm:$0xff] %v2388_v49  ;;  %v543_v53 = vsub.s32 2, %v2388_v49  ;;  %v817_v54 = vsub.s32 3, %v2388_v49 }
  0x28   : >> { %v354_v21 = vld [vmem:[%s2314_s17 + $0x70] sm:$0xff]  ;;  %v348_v28 = vld [vmem:[%s2314_s17 + $0x40] sm:$0xff]  ;;  %v349_v29 = vld [vmem:[%s2314_s17 + $0x48] sm:$0xff]  ;;  %v813_v56 = vsub.s32 1, %v2388_v49  ;;  %v2399_v58 = vsub.s32 0, %v2388_v49  ;;  %s1957_s9 = sshll.u32 %s1611_s29, 2 }
  0x29   : >> { %v358_v22 = vld [vmem:[%s2314_s17 + $0x90] sm:$0xff]  ;;  %v353_v30 = vld [vmem:[%s2314_s17 + $0x68] sm:$0xff]  ;;  %v351_v31 = vld [vmem:[%s2314_s17 + $0x58] sm:$0xff]  ;;  %s1617_s14 = sadd.s32 %s1957_s9, %s1614_s8  ;;  %s337_s16 = sadd.s32 1, %s2121_s16  }
  0x2a   : >> { %708 = vperm.xlu0 %2013, %v346_v16   ;;  %688 = vperm.xlu1 %2011, %v341_v17   ;;  %v362_v24 = vld [vmem:[%s2314_s17 + $0xb0] sm:$0xff]  ;;  %v357_v32 = vld [vmem:[%s2314_s17 + $0x88] sm:$0xff]  ;;  %v352_v33 = vld [vmem:[%s2314_s17 + $0x60] sm:$0xff]  ;;  %s1618_s19 = scalar_lea.vmem %s301_s15, %s1617_s14 [#allocation2]  ;;  %p334_p11 = scmp.ge.s32.totalorder %s337_s16, 2  }
  0x2b   : >> { %v366_v25 = vld [vmem:[%s2314_s17 + $0xd0] sm:$0xff]  ;;  %v361_v34 = vld [vmem:[%s2314_s17 + $0xa8] sm:$0xff]  ;;  %v355_v36 = vld [vmem:[%s2314_s17 + $0x78] sm:$0xff]  ;;  %s3312_s29 = sand.u32 (%p334_p11), 1, %s2109_s25   ;;  %s2128_s4 = smov (%p334_p11), [#allocation2]  }
  0x2c   : >> { %v2350_v35 = vld [vmem:[%s2314_s17 + $0xc8] sm:$0xff]  ;;  %v356_v38 = vld [vmem:[%s2314_s17 + $0x80] sm:$0xff]  ;;  %v370_v39 = vld [vmem:[%s2314_s17 + $0xf0] sm:$0xff]  ;;  %s1621_s8 = scalar_lea.sflag (%p334_p11), [#allocation3], %s3312_s29  ;;  %s2055_s13 = sshll.u32 (%p334_p11), %s2128_s4, 4  ;;  %s2056_s13 = int_to_ptr.vmem [resolvable:$false] %s2055_s13 }
  0x2d   : >> { %v2357_v37 = vld [vmem:[%s2314_s17 + $0xe8] sm:$0xff]  ;;  %v359_v40 = vld [vmem:[%s2314_s17 + $0x98] sm:$0xff]  ;;  %v3206_v5 = vld [vmem:[#allocation6_spill] sm:$0xff]  ;;  %s2057_s23 = scalar_lea.vmem (%p334_p11), %s2056_s13, 128 }
  0x2e   : >> { %724 = vperm.xlu0 %2013, %v350_v18   ;;  %2012 = vset.pattern.permute.xlu1 %v3174_v20  ;;  %v360_v41 = vld [vmem:[%s2314_s17 + $0xa0] sm:$0xff]  ;;  %v363_v43 = vld [vmem:[%s2314_s17 + $0xb8] sm:$0xff]  ;;  %v3236_v4 = vld [vmem:[#allocation5_spill] sm:$0xff] }
  0x2f   : >> { %393 = vperm.xlu1 %2012, %v343_v19   ;;  %v364_v51 = vld [vmem:[%s2314_s17 + $0xc0] sm:$0xff]  ;;  %v3239_v6 = vld [vmem:[#allocation7_spill] sm:$0xff] }
  0x30   : >> { %v375_v55 = vld [vmem:[%s374_s20] sm:$0xf] }
  0x31   : >> { %v544_v60 = vrot.slane %v375_v55, %v543_v53  ;;  %v818_v61 = vrot.slane %v375_v55, %v817_v54  ;;  %v814_v62 = vrot.slane %v375_v55, %v813_v56  ;;  %v540_v63 = vrot.slane %v375_v55, %v2399_v58  ;;  %v3240_v7 = vld [vmem:[#allocation8_spill] sm:$0xff] }
  0x32   : >> { %740 = vperm.xlu0 %2013, %v354_v21  }
  0x33   : >> { %2014 = vset.pattern.permute.xlu1 %v2123_v13 }
  0x34   : >> { %696 = vperm.xlu1 %2014, %v343_v19   ;;  %v2416_v19 = vrot.slane %v540_v63, %v2399_v58 }
  0x36   : >> { %756 = vperm.xlu0 %2013, %v358_v22  }
  0x38   : >> { %2015 = vset.pattern.permute.xlu1 %v3174_v20 }
  0x39   : >> { %398 = vperm.xlu1 %2015, %v344_v23  }
  0x3a   : >> { %772 = vperm.xlu0 %2013, %v362_v24  }
  0x3d   : >> { %2016 = vset.pattern.permute.xlu1 %v2123_v13 }
  0x3e   : >> { %788 = vperm.xlu0 %2013, %v366_v25   ;;  %700 = vperm.xlu1 %2016, %v344_v23   ;;  %v367_v23 = vld [vmem:[%s2314_s17 + $0xd8] sm:$0xff] }
  0x42   : >> { %2038 = vset.pattern.permute.xlu0 %v3174_v20  ;;  %704 = vperm.xlu1 %2016, %v345_v26  }
  0x43   : >> { %378 = vperm.xlu0 %2038, %v340_v15  }
  0x46   : >> { %2017 = vset.pattern.permute.xlu1 %v3174_v20 }
  0x47   : >> { %383 = vperm.xlu0 %2038, %v341_v17   ;;  %413 = vperm.xlu1 %2017, %v347_v27   ;;  %v2410_v17 = vrot.slane %v818_v61, %v813_v56 }
  0x4b   : >> { %388 = vperm.xlu0 %2038, %v342_v14   ;;  %2018 = vset.pattern.permute.xlu1 %v2123_v13 }
  0x4c   : >> { %712 = vperm.xlu1 %2018, %v347_v27  }
  0x4f   : >> { %403 = vperm.xlu0 %2038, %v345_v26  }
  0x50   : >> { %2019 = vset.pattern.permute.xlu1 %v3174_v20 }
  0x51   : >> { %418 = vperm.xlu1 %2019, %v348_v28  }
  0x53   : >> { %408 = vperm.xlu0 %2038, %v346_v16   ;;  %v2408_v16 = vrot.slane %v544_v60, %v2399_v58 }
  0x55   : >> { %2020 = vset.pattern.permute.xlu1 %v2123_v13 }
  0x56   : >> { %716 = vperm.xlu1 %2020, %v348_v28  }
  0x57   : >> { %423 = vperm.xlu0 %2038, %v349_v29  }
  0x5a   : >> { %720 = vperm.xlu1 %2020, %v349_v29  }
  0x5b   : >> { %428 = vperm.xlu0 %2038, %v350_v18   ;;  %v2413_v18 = vrot.slane %v814_v62, %v813_v56 }
  0x5e   : >> { %2021 = vset.pattern.permute.xlu1 %v3174_v20 }
  0x5f   : >> { %443 = vperm.xlu0 %2038, %v353_v30   ;;  %433 = vperm.xlu1 %2021, %v351_v31  }
  0x63   : >> { %448 = vperm.xlu0 %2038, %v354_v21   ;;  %2022 = vset.pattern.permute.xlu1 %v2123_v13 }
  0x64   : >> { %728 = vperm.xlu1 %2022, %v351_v31  }
  0x67   : >> { %463 = vperm.xlu0 %2038, %v357_v32  }
  0x68   : >> { %2023 = vset.pattern.permute.xlu1 %v3174_v20 }
  0x69   : >> { %438 = vperm.xlu1 %2023, %v352_v33  }
  0x6b   : >> { %468 = vperm.xlu0 %2038, %v358_v22  }
  0x6d   : >> { %2024 = vset.pattern.permute.xlu1 %v2123_v13 }
  0x6e   : >> { %732 = vperm.xlu1 %2024, %v352_v33  }
  0x6f   : >> { %483 = vperm.xlu0 %2038, %v361_v34  }
  0x72   : >> { %736 = vperm.xlu1 %2024, %v353_v30  }
  0x73   : >> { %488 = vperm.xlu0 %2038, %v362_v24  }
  0x76   : >> { %2025 = vset.pattern.permute.xlu1 %v3174_v20 }
  0x77   : >> { %503 = vperm.xlu0 %2038, %v2350_v35   ;;  %453 = vperm.xlu1 %2025, %v355_v36  }
  0x7b   : >> { %508 = vperm.xlu0 %2038, %v366_v25   ;;  %2026 = vset.pattern.permute.xlu1 %v2123_v13 }
  0x7c   : >> { %744 = vperm.xlu1 %2026, %v355_v36  }
  0x7f   : >> { %523 = vperm.xlu0 %2038, %v2357_v37  }
  0x80   : >> { %2027 = vset.pattern.permute.xlu1 %v3174_v20 }
  0x81   : >> { %458 = vperm.xlu1 %2027, %v356_v38  }
  0x83   : >> { %528 = vperm.xlu0 %2038, %v370_v39  }
  0x85   : >> { %2028 = vset.pattern.permute.xlu1 %v2123_v13 }
  0x86   : >> { %748 = vperm.xlu1 %2028, %v356_v38  }
  0x87   : >> { %2043 = vset.pattern.permute.xlu0 %v2123_v13 }
  0x88   : >> { %804 = vperm.xlu0 %2043, %v370_v39  }
  0x8a   : >> { %752 = vperm.xlu1 %2028, %v357_v32  }
  0x8c   : >> { %2046 = vset.pattern.permute.xlu0 %v3174_v20 }
  0x8d   : >> { %1329 = vperm.xlu0 %2046, %v3206_v5  }
  0x8e   : >> { %2029 = vset.pattern.permute.xlu1 %v3174_v20 }
  0x8f   : >> { %473 = vperm.xlu1 %2029, %v359_v40  }
  0x91   : >> { %1507 = vperm.xlu0 %2046, %v3207_v8  }
  0x93   : >> { %2030 = vset.pattern.permute.xlu1 %v2123_v13 }
  0x94   : >> { %760 = vperm.xlu1 %2030, %v359_v40  }
  0x95   : >> { %1517 = vperm.xlu0 %2046, %v3208_v10  }
  0x98   : >> { %2031 = vset.pattern.permute.xlu1 %v3174_v20 }
  0x99   : >> { %478 = vperm.xlu1 %2031, %v360_v41  }
  0x9d   : >> { %2032 = vset.pattern.permute.xlu1 %v2123_v13 }
  0x9e   : >> { %764 = vperm.xlu1 %2032, %v360_v41  }
  0xa2   : >> { %768 = vperm.xlu1 %2032, %v361_v34  }
  0xa5   : >> { %v693_v42 = vpop.permute.xlu0 %692  ;;  %v2376_v44 = vpop.permute.xlu1 %684 }
  0xa6   : >> { %2033 = vset.pattern.permute.xlu1 %v3174_v20  ;;  %v833_v24 = vsub.f32 %v693_v42, %v2413_v18  ;;  %v834_v25 = vsub.f32 %v693_v42, %v2410_v17  ;;  %v829_v29 = vsub.f32 %v2376_v44, %v2413_v18  ;;  %v830_v30 = vsub.f32 %v2376_v44, %v2410_v17 }
  0xa7   : >> { %493 = vperm.xlu1 %2033, %v363_v43  }
  0xa8   : >> { %v2432_v33 = vand.u32 2147483647, %v833_v24  ;;  %v2434_v34 = vand.u32 2147483647, %v834_v25  ;;  %v893_v53 = vand.u32 2147483647, %v829_v29 }
  0xa9   : >> { %v2379_v45 = vpop.permute.xlu0 %708  ;;  %v2381_v46 = vpop.permute.xlu1 %688  ;;  %v894_v54 = vand.u32 2147483647, %v830_v30 }
  0xaa   : >> { %v831_v39 = vsub.f32 %v2381_v46, %v2413_v18  ;;  %v832_v40 = vsub.f32 %v2381_v46, %v2410_v17 }
  0xab   : >> { %2034 = vset.pattern.permute.xlu1 %v2123_v13 }
  0xac   : >> { %776 = vperm.xlu1 %2034, %v363_v43   ;;  %v895_v63 = vand.u32 2147483647, %v831_v39 }
  0xad   : >> { %v2384_v48 = vpop.permute.xlu0 %724 }
  0xae   : >> { %v394_v50 = vpop.permute.xlu1 %393 }
  0xaf   : >> { %v562_v27 = vsub.f32 %v394_v50, %v2408_v16  ;;  %v561_v31 = vsub.f32 %v394_v50, %v2416_v19 }
  0xb0   : >> { %2035 = vset.pattern.permute.xlu1 %v3174_v20 }
  0xb1   : >> { %v2393_v52 = vpop.permute.xlu0 %740  ;;  %498 = vperm.xlu1 %2035, %v364_v51   ;;  %v626_v41 = vand.u32 2147483647, %v562_v27  ;;  %v625_v55 = vand.u32 2147483647, %v561_v31  ;;  %v368_v27 = vld [vmem:[%s2314_s17 + $0xe0] sm:$0xff] }
  0xb3   : >> { %v697_v57 = vpop.permute.xlu1 %696 }
  0xb4   : >> { %v836_v21 = vsub.f32 %v697_v57, %v2410_v17  ;;  %v835_v28 = vsub.f32 %v697_v57, %v2413_v18 }
  0xb5   : >> { %v2401_v59 = vpop.permute.xlu0 %756  ;;  %2036 = vset.pattern.permute.xlu1 %v2123_v13 }
  0xb6   : >> { %780 = vperm.xlu1 %2036, %v364_v51   ;;  %v900_v32 = vand.u32 2147483647, %v836_v21  ;;  %v899_v42 = vand.u32 2147483647, %v835_v28  ;;  %v896_v28 = vand.u32 2147483647, %v832_v40 }
  0xb8   : >> { %v399_v14 = vpop.permute.xlu1 %398  ;;  %v964_v56 = vmax.f32.f32 %v626_v41, %v900_v32  ;;  %v963_v29 = vmax.f32.f32 %v625_v55, %v899_v42 }
  0xb9   : >> { %v2405_v15 = vpop.permute.xlu0 %772  ;;  %v563_v46 = vsub.f32 %v399_v14, %v2416_v19  ;;  %v564_v57 = vsub.f32 %v399_v14, %v2408_v16  ;;  %v842_v14 = vsub.f32 %v2379_v45, %v2410_v17 }
  0xba   : >> { %784 = vperm.xlu1 %2036, %v2350_v35   ;;  %v841_v35 = vsub.f32 %v2379_v45, %v2413_v18  ;;  %vm2465_vm0 = vcmp.le.f32.partialorder %v964_v56, 1.0  ;;  %vm2478_vm1 = vcmp.le.f32.partialorder %v963_v29, 1.0 }
  0xbb   : >> { %v628_v39 = vand.u32 2147483647, %v564_v57  ;;  %v371_v57 = vld [vmem:[%s2314_s17 + $0xf8] sm:$0xff]  ;;  %s1958_s17 = sshll.u32 (%p334_p11), %s2190_s28, 6 }
  0xbc   : >> { %v2451_v21 = vand.u32 2147483647, %v841_v35  ;;  %s3116_s21 = scalar_lea.hbm (%p334_p11), %s3163_s7, %s1958_s17 }
  0xbd   : >> { %v2419_v22 = vpop.permute.xlu0 %788  ;;  %v701_v26 = vpop.permute.xlu1 %700 }
  0xbe   : >> { %2037 = vset.pattern.permute.xlu1 %v3174_v20  ;;  %v837_v43 = vsub.f32 %v701_v26, %v2413_v18  ;;  %v838_v44 = vsub.f32 %v701_v26, %v2410_v17 }
  0xbf   : >> { %513 = vperm.xlu1 %2037, %v367_v23  }
  0xc0   : >> { %v2460_v30 = vand.u32 2147483647, %v838_v44 }
  0xc1   : >> { %v2438_v36 = vpop.permute.xlu1 %704 }
  0xc2   : >> { %v379_v38 = vpop.permute.xlu0 %378  ;;  %v966_v55 = vmax.f32.f32 %v628_v39, %v2460_v30  ;;  %v839_v56 = vsub.f32 %v2438_v36, %v2413_v18 }
  0xc3   : >> { %v555_v50 = vsub.f32 %v379_v38, %v2416_v19  ;;  %v556_v51 = vsub.f32 %v379_v38, %v2408_v16  ;;  %2039 = vset.pattern.permute.xlu1 %v2123_v13  ;;  %v2469_v38 = vand.u32 2147483647, %v563_v46 }
  0xc4   : >> { %792 = vperm.xlu1 %2039, %v367_v23   ;;  %v2458_v23 = vand.u32 2147483647, %v837_v43  ;;  %v903_v29 = vand.u32 2147483647, %v839_v56  ;;  %vm2538_vm12 = vcmp.le.f32.partialorder %v966_v55, 1.0 }
  0xc5   : >> { %v619_v60 = vand.u32 2147483647, %v555_v50  ;;  %v620_v61 = vand.u32 2147483647, %v556_v51 }
  0xc6   : >> { %v384_v62 = vpop.permute.xlu0 %383  ;;  %v2455_v26 = vpop.permute.xlu1 %413  ;;  %v965_v51 = vmax.f32.f32 %v2469_v38, %v2458_v23 }
  0xc7   : >> { %v557_v24 = vsub.f32 %v384_v62, %v2416_v19  ;;  %v558_v25 = vsub.f32 %v384_v62, %v2408_v16  ;;  %v958_v41 = vmax.f32.f32 %v620_v61, %v894_v54  ;;  %v957_v42 = vmax.f32.f32 %v619_v60, %v893_v53 }
  0xc8   : >> { %2040 = vset.pattern.permute.xlu1 %v3174_v20  ;;  %v840_v53 = vsub.f32 %v2438_v36, %v2410_v17  ;;  %v569_v23 = vsub.f32 %v2455_v26, %v2416_v19  ;;  %vm2549_vm13 = vcmp.le.f32.partialorder %v965_v51, 1.0 }
  0xc9   : >> { %v621_v31 = vand.u32 2147483647, %v557_v24  ;;  %v622_v32 = vand.u32 2147483647, %v558_v25  ;;  %518 = vperm.xlu1 %2040, %v368_v27   ;;  %vm1022_vm2 = vcmp.le.f32.partialorder %v958_v41, 1.0  ;;  %v570_v24 = vsub.f32 %v2455_v26, %v2408_v16 }
  0xca   : >> { %v389_v40 = vpop.permute.xlu0 %388  ;;  %vm1021_vm6 = vcmp.le.f32.partialorder %v957_v42, 1.0  ;;  %v633_v56 = vand.u32 2147483647, %v569_v23 }
  0xcb   : >> { %v559_v43 = vsub.f32 %v389_v40, %v2416_v19  ;;  %v560_v44 = vsub.f32 %v389_v40, %v2408_v16  ;;  %v960_v45 = vmax.f32.f32 %v622_v32, %v896_v28  ;;  %v959_v50 = vmax.f32.f32 %v621_v31, %v895_v63  ;;  %v713_v46 = vpop.permute.xlu1 %712 }
  0xcc   : >> { %v844_v61 = vsub.f32 %v713_v46, %v2410_v17  ;;  %v843_v62 = vsub.f32 %v713_v46, %v2413_v18  ;;  %v3177_v32 = vmov 1.0|1.0  }
  0xcd   : >> { %v623_v54 = vand.u32 2147483647, %v559_v43  ;;  %v624_v60 = vand.u32 2147483647, %v560_v44  ;;  %2041 = vset.pattern.permute.xlu1 %v2123_v13  ;;  %vm1024_vm3 = vcmp.le.f32.partialorder %v960_v45, 1.0  ;;  %vm1023_vm4 = vcmp.le.f32.partialorder %v959_v50, 1.0 }
  0xce   : >> { %v404_v63 = vpop.permute.xlu0 %403  ;;  %796 = vperm.xlu1 %2041, %v368_v27   ;;  %vm2491_vm5 = vmpackc.low %vm1024_vm3, %vm1022_vm2  ;;  %v908_v27 = vand.u32 2147483647, %v844_v61  ;;  %v907_v38 = vand.u32 2147483647, %v843_v62  ;;  %v906_v43 = vand.u32 2147483647, %v842_v14  ;;  %v849_v61 = vsub.f32 %v2384_v48, %v2413_v18 }
  0xcf   : >> { %v961_v25 = vmax.f32.f32 %v623_v54, %v2432_v33  ;;  %v962_v28 = vmax.f32.f32 %v624_v60, %v2434_v34  ;;  %v565_v30 = vsub.f32 %v404_v63, %v2416_v19  ;;  %v566_v31 = vsub.f32 %v404_v63, %v2408_v16  ;;  %1747 = vmatprep.subr.msk.bf16.mxu0 %vm2491_vm5, %v3177_v32  ;;  %vm2505_vm7 = vmpackc.low %vm1023_vm4, %vm1021_vm6 }
  0xd0   : >> { %1813 = vmatprep.subr.msk.bf16.mxu1 %vm2491_vm5, %v3177_v32  ;;  %v904_v34 = vand.u32 2147483647, %v840_v53  ;;  %1749 = vmatpush1.bf16.msk.msra.mxu0 %vm2505_vm7, %v3177_v32  ;;  %v2515_v26 = vpop.permute.xlu1 %418  ;;  %v634_v44 = vand.u32 2147483647, %v570_v24  ;;  %v971_v55 = vmax.f32.f32 %v633_v56, %v907_v38  ;;  %v850_v56 = vsub.f32 %v2384_v48, %v2410_v17 }
  0xd1   : >> { %1815 = vmatpush1.bf16.msk.msra.mxu1 %vm2505_vm7, %v3177_v32  ;;  %vm1026_vm8 = vcmp.le.f32.partialorder %v962_v28, 1.0  ;;  %vm1025_vm9 = vcmp.le.f32.partialorder %v961_v25, 1.0  ;;  %v629_v39 = vand.u32 2147483647, %v565_v30  ;;  %v630_v40 = vand.u32 2147483647, %v566_v31 }
  0xd2   : >> { %v409_v41 = vpop.permute.xlu0 %408  ;;  %vm2519_vm10 = vmpackc.low %vm2465_vm0, %vm1026_vm8  ;;  %800 = vperm.xlu1 %2041, %v2357_v37   ;;  %v972_v37 = vmax.f32.f32 %v634_v44, %v908_v27  ;;  %v572_v62 = vsub.f32 %v2515_v26, %v2408_v16  ;;  %v571_v30 = vsub.f32 %v2515_v26, %v2416_v19  ;;  %vm1035_vm8 = vcmp.le.f32.partialorder %v971_v55, 1.0 }
  0xd3   : >> { %v567_v45 = vsub.f32 %v409_v41, %v2416_v19  ;;  %v568_v50 = vsub.f32 %v409_v41, %v2408_v16  ;;  %1751 = vmatprep.subr.msk.bf16.mxu0 %vm2519_vm10, %v3177_v32  ;;  %vm2531_vm11 = vmpackc.low %vm2478_vm1, %vm1025_vm9  ;;  %v967_v14 = vmax.f32.f32 %v629_v39, %v903_v29  ;;  %v968_v46 = vmax.f32.f32 %v630_v40, %v904_v34 }
  0xd4   : >> { %1817 = vmatprep.subr.msk.bf16.mxu1 %vm2519_vm10, %v3177_v32  ;;  %1753 = vmatpush1.bf16.msk.msra.mxu0 %vm2531_vm11, %v3177_v32  ;;  %vm1036_vm3 = vcmp.le.f32.partialorder %v972_v37, 1.0  ;;  %v636_v26 = vand.u32 2147483647, %v572_v62 }
  0xd5   : >> { %v631_v54 = vand.u32 2147483647, %v567_v45  ;;  %v632_v60 = vand.u32 2147483647, %v568_v50  ;;  %1819 = vmatpush1.bf16.msk.msra.mxu1 %vm2531_vm11, %v3177_v32  ;;  %v717_v63 = vpop.permute.xlu1 %716  ;;  %vm1032_vm14 = vcmp.le.f32.partialorder %v968_v46, 1.0  ;;  %vm1031_vm15 = vcmp.le.f32.partialorder %v967_v14, 1.0 }
  0xd6   : >> { %v424_v24 = vpop.permute.xlu0 %423  ;;  %v845_v29 = vsub.f32 %v717_v63, %v2413_v18  ;;  %v846_v23 = vsub.f32 %v717_v63, %v2410_v17  ;;  %2042 = vset.pattern.permute.xlu1 %v3174_v20  ;;  %vm2561_vm0 = vmpackc.low %vm1032_vm14, %vm2538_vm12  ;;  %v635_v14 = vand.u32 2147483647, %v571_v30 }
  0xd7   : >> { %v969_v25 = vmax.f32.f32 %v631_v54, %v2451_v21  ;;  %v970_v28 = vmax.f32.f32 %v632_v60, %v906_v43  ;;  %v573_v31 = vsub.f32 %v424_v24, %v2416_v19  ;;  %v574_v21 = vsub.f32 %v424_v24, %v2408_v16  ;;  %533 = vperm.xlu1 %2042, %v371_v57   ;;  %vm2574_vm1 = vmpackc.low %vm1031_vm15, %vm2549_vm13 }
  0xd8   : >> { %1755 = vmatprep.subr.msk.bf16.mxu0 %vm2561_vm0, %v3177_v32  ;;  %v910_v27 = vand.u32 2147483647, %v846_v23  ;;  %1821 = vmatprep.subr.msk.bf16.mxu1 %vm2561_vm0, %v3177_v32  ;;  %v909_v38 = vand.u32 2147483647, %v845_v29 }
  0xd9   : >> { %1757 = vmatpush1.bf16.msk.msra.mxu0 %vm2574_vm1, %v3177_v32  ;;  %vm1034_vm2 = vcmp.le.f32.partialorder %v970_v28, 1.0  ;;  %vm1033_vm4 = vcmp.le.f32.partialorder %v969_v25, 1.0  ;;  %1823 = vmatpush1.bf16.msk.msra.mxu1 %vm2574_vm1, %v3177_v32  ;;  %v721_v39 = vpop.permute.xlu1 %720  ;;  %v637_v41 = vand.u32 2147483647, %v573_v31  ;;  %v638_v43 = vand.u32 2147483647, %v574_v21 }
  0xda   : >> { %vm2587_vm6 = vmpackc.low %vm1036_vm3, %vm1034_vm2  ;;  %v847_v44 = vsub.f32 %v721_v39, %v2413_v18  ;;  %v848_v45 = vsub.f32 %v721_v39, %v2410_v17  ;;  %v429_v46 = vpop.permute.xlu0 %428  ;;  %v974_v53 = vmax.f32.f32 %v636_v26, %v910_v27  ;;  %v973_v55 = vmax.f32.f32 %v635_v14, %v909_v38 }
  0xdb   : >> { %1759 = vmatprep.subr.msk.bf16.mxu0 %vm2587_vm6, %v3177_v32  ;;  %vm2596_vm9 = vmpackc.low %vm1035_vm8, %vm1033_vm4  ;;  %2044 = vset.pattern.permute.xlu1 %v2123_v13  ;;  %v576_v60 = vsub.f32 %v429_v46, %v2408_v16  ;;  %v575_v13 = vsub.f32 %v429_v46, %v2416_v19  ;;  %v914_v25 = vand.u32 2147483647, %v850_v56 }
  0xdc   : >> { %1825 = vmatprep.subr.msk.bf16.mxu1 %vm2587_vm6, %v3177_v32  ;;  %v911_v37 = vand.u32 2147483647, %v847_v44  ;;  %v912_v54 = vand.u32 2147483647, %v848_v45  ;;  %808 = vperm.xlu1 %2044, %v371_v57   ;;  %vm1038_vm12 = vcmp.le.f32.partialorder %v974_v53, 1.0  ;;  %vm1037_vm2 = vcmp.le.f32.partialorder %v973_v55, 1.0 }
  0xdd   : >> { %1761 = vmatpush1.bf16.msk.msra.mxu0 %vm2596_vm9, %v3177_v32  ;;  %1827 = vmatpush1.bf16.msk.msra.mxu1 %vm2596_vm9, %v3177_v32  ;;  %v640_v28 = vand.u32 2147483647, %v576_v60  ;;  %v913_v57 = vand.u32 2147483647, %v849_v61  ;;  %v639_v29 = vand.u32 2147483647, %v575_v13 }
  0xde   : >> { %v975_v62 = vmax.f32.f32 %v637_v41, %v911_v37  ;;  %v976_v63 = vmax.f32.f32 %v638_v43, %v912_v54  ;;  %v434_v24 = vpop.permute.xlu1 %433  ;;  %v3176_v53 = vmov 1065369472   ;;  %v3241_v37 = vmov 0  ;;  %v444_v54 = vpop.permute.xlu0 %443 }
  0xdf   : >> { %v577_v48 = vsub.f32 %v434_v24, %v2416_v19  ;;  %v578_v30 = vsub.f32 %v434_v24, %v2408_v16  ;;  %v978_v27 = vmax.f32.f32 %v640_v28, %v914_v25  ;;  %v977_v39 = vmax.f32.f32 %v639_v29, %v913_v57  ;;  %1213 = vmatprep.mubr.bf16.mxu0 %v3176_v53 }
  0xe0   : >> { %vm1040_vm13 = vcmp.le.f32.partialorder %v976_v63, 1.0  ;;  %vm1039_vm14 = vcmp.le.f32.partialorder %v975_v62, 1.0  ;;  %2045 = vset.pattern.permute.xlu1 %v3174_v20  ;;  %v3243_v60 = vmov 0  ;;  %v581_v61 = vsub.f32 %v444_v54, %v2416_v19 }
  0xe1   : >> { %vm2618_vm15 = vmpackc.low %vm1040_vm13, %vm1038_vm12  ;;  %1324 = vperm.xlu1 %2045, %v3236_v4   ;;  %v641_v41 = vand.u32 2147483647, %v577_v48  ;;  %v642_v43 = vand.u32 2147483647, %v578_v30  ;;  %vm1042_vm4 = vcmp.le.f32.partialorder %v978_v27, 1.0  ;;  %vm1041_vm8 = vcmp.le.f32.partialorder %v977_v39, 1.0 }
  0xe2   : >> { %1763 = vmatprep.subr.msk.bf16.mxu0 %vm2618_vm15, %v3177_v32  ;;  %1829 = vmatprep.subr.msk.bf16.mxu1 %vm2618_vm15, %v3177_v32  ;;  %vm2630_vm3 = vmpackc.low %vm1039_vm14, %vm1037_vm2  ;;  %v582_v13 = vsub.f32 %v444_v54, %v2408_v16  ;;  %v645_v57 = vand.u32 2147483647, %v581_v61 }
  0xe3   : >> { %1765 = vmatpush1.bf16.msk.msra.mxu0 %vm2630_vm3, %v3177_v32  ;;  %1831 = vmatpush1.bf16.msk.msra.mxu1 %vm2630_vm3, %v3177_v32  ;;  %v729_v21 = vpop.permute.xlu1 %728 }
  0xe4   : >> { %v851_v26 = vsub.f32 %v729_v21, %v2413_v18  ;;  %v852_v38 = vsub.f32 %v729_v21, %v2410_v17  ;;  %v646_v30 = vand.u32 2147483647, %v582_v13 }
  0xe5   : >> { %1334 = vperm.xlu1 %2045, %v3239_v6  }
  0xe6   : >> { %v915_v44 = vand.u32 2147483647, %v851_v26  ;;  %v916_v45 = vand.u32 2147483647, %v852_v38 }
  0xe8   : >> { %v979_v56 = vmax.f32.f32 %v641_v41, %v915_v44  ;;  %v980_v14 = vmax.f32.f32 %v642_v43, %v916_v45  ;;  %v439_v46 = vpop.permute.xlu1 %438  ;;  %v449_v44 = vpop.permute.xlu0 %448 }
  0xe9   : >> { %1339 = vperm.xlu1 %2045, %v3240_v7   ;;  %v580_v62 = vsub.f32 %v439_v46, %v2408_v16  ;;  %v579_v25 = vsub.f32 %v439_v46, %v2416_v19  ;;  %v583_v13 = vsub.f32 %v449_v44, %v2416_v19  ;;  %v881_v7 = vsub.f32 %v2419_v22, %v2413_v18 }
  0xea   : >> { %vm1044_vm12 = vcmp.le.f32.partialorder %v980_v14, 1.0  ;;  %vm1043_vm13 = vcmp.le.f32.partialorder %v979_v56, 1.0  ;;  %v858_v56 = vsub.f32 %v2393_v52, %v2410_v17  ;;  %v584_v14 = vsub.f32 %v449_v44, %v2408_v16 }
  0xeb   : >> { %vm2645_vm14 = vmpackc.low %vm1044_vm12, %vm1042_vm4  ;;  %v644_v21 = vand.u32 2147483647, %v580_v62  ;;  %v643_v38 = vand.u32 2147483647, %v579_v25 }
  0xec   : >> { %v3242_v37 = vsel %vm2645_vm14, 4294967295, %v3241_v37  ;;  %1767 = vmatprep.subr.msk.bf16.mxu0 %vm2645_vm14, %v3177_v32  ;;  %1833 = vmatprep.subr.msk.bf16.mxu1 %vm2645_vm14, %v3177_v32  ;;  %vm2655_vm2 = vmpackc.low %vm1043_vm13, %vm1041_vm8  ;;  %v648_v25 = vand.u32 2147483647, %v584_v14  ;;  %v3251_v14 = vmov 0 }
  0xed   : >> { %v3244_v60 = vsel %vm2655_vm2, 4294967295, %v3243_v60  ;;  %1769 = vmatpush1.bf16.msk.msra.mxu0 %vm2655_vm2, %v3177_v32  ;;  %1835 = vmatpush1.bf16.msk.msra.mxu1 %vm2655_vm2, %v3177_v32  ;;  %v733_v55 = vpop.permute.xlu1 %732 }
  0xee   : >> { %v853_v63 = vsub.f32 %v733_v55, %v2413_v18  ;;  %v854_v24 = vsub.f32 %v733_v55, %v2410_v17  ;;  %1512 = vperm.xlu1 %2045, %v3245_v9   ;;  %v857_v55 = vsub.f32 %v2393_v52, %v2413_v18  ;;  %v3249_v52 = vmov 0 }
  0xf0   : >> { %v918_v28 = vand.u32 2147483647, %v854_v24  ;;  %v917_v29 = vand.u32 2147483647, %v853_v63  ;;  %v3247_v63 = vmov 0 }
  0xf1   : >> { %v737_v48 = vpop.permute.xlu1 %736  ;;  %v922_v24 = vand.u32 2147483647, %v858_v56 }
  0xf2   : >> { %v855_v27 = vsub.f32 %v737_v48, %v2413_v18  ;;  %v856_v26 = vsub.f32 %v737_v48, %v2410_v17  ;;  %1522 = vperm.xlu1 %2045, %v3246_v11   ;;  %v982_v39 = vmax.f32.f32 %v644_v21, %v918_v28  ;;  %v981_v45 = vmax.f32.f32 %v643_v38, %v917_v29 }
  0xf3   : >> { %v647_v29 = vand.u32 2147483647, %v583_v13 }
  0xf4   : >> { %v919_v41 = vand.u32 2147483647, %v855_v27  ;;  %v920_v43 = vand.u32 2147483647, %v856_v26  ;;  %vm1046_vm4 = vcmp.le.f32.partialorder %v982_v39, 1.0  ;;  %vm1045_vm2 = vcmp.le.f32.partialorder %v981_v45, 1.0 }
  0xf5   : >> { %v986_v26 = vmax.f32.f32 %v648_v25, %v922_v24 }
  0xf6   : >> { %v983_v46 = vmax.f32.f32 %v645_v57, %v919_v41  ;;  %v984_v54 = vmax.f32.f32 %v646_v30, %v920_v43  ;;  %v454_v61 = vpop.permute.xlu1 %453  ;;  %v921_v57 = vand.u32 2147483647, %v857_v55 }
  0xf7   : >> { %v585_v62 = vsub.f32 %v454_v61, %v2416_v19  ;;  %v586_v28 = vsub.f32 %v454_v61, %v2408_v16 }
  0xf8   : >> { %vm1048_vm8 = vcmp.le.f32.partialorder %v984_v54, 1.0  ;;  %vm1047_vm12 = vcmp.le.f32.partialorder %v983_v46, 1.0  ;;  %v985_v43 = vmax.f32.f32 %v647_v29, %v921_v57  ;;  %v464_v46 = vpop.permute.xlu0 %463  ;;  %v3253_v54 = vmov 0 }
  0xf9   : >> { %vm2682_vm13 = vmpackc.low %vm1048_vm8, %vm1046_vm4  ;;  %v649_v27 = vand.u32 2147483647, %v585_v62  ;;  %v650_v38 = vand.u32 2147483647, %v586_v28  ;;  %v589_v61 = vsub.f32 %v464_v46, %v2416_v19  ;;  %v590_v13 = vsub.f32 %v464_v46, %v2408_v16 }
  0xfa   : >> { %v3248_v63 = vsel %vm2682_vm13, 4294967295, %v3247_v63  ;;  %1771 = vmatprep.subr.msk.bf16.mxu0 %vm2682_vm13, %v3177_v32  ;;  %1837 = vmatprep.subr.msk.bf16.mxu1 %vm2682_vm13, %v3177_v32  ;;  %vm2693_vm14 = vmpackc.low %vm1047_vm12, %vm1045_vm2  ;;  %vm1050_vm2 = vcmp.le.f32.partialorder %v986_v26, 1.0 }
  0xfb   : >> { %v3250_v52 = vsel %vm2693_vm14, 4294967295, %v3249_v52  ;;  %1773 = vmatpush1.bf16.msk.msra.mxu0 %vm2693_vm14, %v3177_v32  ;;  %1839 = vmatpush1.bf16.msk.msra.mxu1 %vm2693_vm14, %v3177_v32  ;;  %v745_v48 = vpop.permute.xlu1 %744  ;;  %vm1049_vm14 = vcmp.le.f32.partialorder %v985_v43, 1.0  ;;  %v653_v29 = vand.u32 2147483647, %v589_v61 }
  0xfc   : >> { %v859_v30 = vsub.f32 %v745_v48, %v2413_v18  ;;  %v860_v21 = vsub.f32 %v745_v48, %v2410_v17 }
  0xfe   : >> { %v923_v39 = vand.u32 2147483647, %v859_v30  ;;  %v924_v41 = vand.u32 2147483647, %v860_v21  ;;  %v654_v21 = vand.u32 2147483647, %v590_v13  ;;  %v865_v13 = vsub.f32 %v2401_v59, %v2413_v18 }
 0x100   : >> { %v987_v44 = vmax.f32.f32 %v649_v27, %v923_v39  ;;  %v988_v45 = vmax.f32.f32 %v650_v38, %v924_v41  ;;  %v459_v56 = vpop.permute.xlu1 %458 }
 0x101   : >> { %v588_v62 = vsub.f32 %v459_v56, %v2408_v16  ;;  %v587_v28 = vsub.f32 %v459_v56, %v2416_v19 }
 0x102   : >> { %vm1052_vm4 = vcmp.le.f32.partialorder %v988_v45, 1.0  ;;  %vm1051_vm8 = vcmp.le.f32.partialorder %v987_v44, 1.0  ;;  %v469_v45 = vpop.permute.xlu0 %468 }
 0x103   : >> { %vm2705_vm12 = vmpackc.low %vm1052_vm4, %vm1050_vm2  ;;  %v652_v27 = vand.u32 2147483647, %v588_v62  ;;  %v651_v39 = vand.u32 2147483647, %v587_v28  ;;  %v592_v56 = vsub.f32 %v469_v45, %v2408_v16  ;;  %v591_v62 = vsub.f32 %v469_v45, %v2416_v19 }
 0x104   : >> { %v3252_v14 = vsel %vm2705_vm12, 4294967295, %v3251_v14  ;;  %1775 = vmatprep.subr.msk.bf16.mxu0 %vm2705_vm12, %v3177_v32  ;;  %1841 = vmatprep.subr.msk.bf16.mxu1 %vm2705_vm12, %v3177_v32  ;;  %vm2715_vm13 = vmpackc.low %vm1051_vm8, %vm1049_vm14 }
 0x105   : >> { %v3254_v54 = vsel %vm2715_vm13, 4294967295, %v3253_v54  ;;  %1777 = vmatpush1.bf16.msk.msra.mxu0 %vm2715_vm13, %v3177_v32  ;;  %1843 = vmatpush1.bf16.msk.msra.mxu1 %vm2715_vm13, %v3177_v32  ;;  %v749_v55 = vpop.permute.xlu1 %748 }
 0x106   : >> { %v861_v24 = vsub.f32 %v749_v55, %v2413_v18  ;;  %v862_v25 = vsub.f32 %v749_v55, %v2410_v17  ;;  %v866_v55 = vsub.f32 %v2401_v59, %v2410_v17  ;;  %v3257_v59 = vmov 0 }
 0x108   : >> { %v926_v57 = vand.u32 2147483647, %v862_v25  ;;  %v925_v48 = vand.u32 2147483647, %v861_v24 }
 0x109   : >> { %v753_v30 = vpop.permute.xlu1 %752 }
 0x10a   : >> { %v863_v26 = vsub.f32 %v753_v30, %v2413_v18  ;;  %v864_v38 = vsub.f32 %v753_v30, %v2410_v17  ;;  %v990_v41 = vmax.f32.f32 %v652_v27, %v926_v57  ;;  %v989_v46 = vmax.f32.f32 %v651_v39, %v925_v48 }
 0x10b   : >> { %v3255_v57 = vmov 0  ;;  %v930_v48 = vand.u32 2147483647, %v866_v55  ;;  %v656_v30 = vand.u32 2147483647, %v592_v56 }
 0x10c   : >> { %v927_v43 = vand.u32 2147483647, %v863_v26  ;;  %v928_v44 = vand.u32 2147483647, %v864_v38  ;;  %vm1054_vm14 = vcmp.le.f32.partialorder %v990_v41, 1.0  ;;  %vm1053_vm13 = vcmp.le.f32.partialorder %v989_v46, 1.0 }
 0x10d   : >> { %v655_v27 = vand.u32 2147483647, %v591_v62 }
 0x10e   : >> { %v991_v61 = vmax.f32.f32 %v653_v29, %v927_v43  ;;  %v992_v24 = vmax.f32.f32 %v654_v21, %v928_v44  ;;  %v474_v25 = vpop.permute.xlu1 %473  ;;  %v929_v21 = vand.u32 2147483647, %v865_v13  ;;  %v994_v43 = vmax.f32.f32 %v656_v30, %v930_v48 }
 0x10f   : >> { %v593_v28 = vsub.f32 %v474_v25, %v2416_v19  ;;  %v594_v29 = vsub.f32 %v474_v25, %v2408_v16  ;;  %v3259_v25 = vmov 0  ;;  %v3261_v13 = vmov 0 }
 0x110   : >> { %vm1056_vm2 = vcmp.le.f32.partialorder %v992_v24, 1.0  ;;  %vm1055_vm4 = vcmp.le.f32.partialorder %v991_v61, 1.0  ;;  %v993_v55 = vmax.f32.f32 %v655_v27, %v929_v21 }
 0x111   : >> { %vm2740_vm8 = vmpackc.low %vm1056_vm2, %vm1054_vm14  ;;  %v657_v41 = vand.u32 2147483647, %v593_v28  ;;  %v658_v44 = vand.u32 2147483647, %v594_v29  ;;  %v484_v28 = vpop.permute.xlu0 %483 }
 0x112   : >> { %v3256_v57 = vsel %vm2740_vm8, 4294967295, %v3255_v57  ;;  %1779 = vmatprep.subr.msk.bf16.mxu0 %vm2740_vm8, %v3177_v32  ;;  %1845 = vmatprep.subr.msk.bf16.mxu1 %vm2740_vm8, %v3177_v32  ;;  %vm2751_vm12 = vmpackc.low %vm1055_vm4, %vm1053_vm13  ;;  %vm1058_vm13 = vcmp.le.f32.partialorder %v994_v43, 1.0  ;;  %v597_v21 = vsub.f32 %v484_v28, %v2416_v19 }
 0x113   : >> { %v3258_v59 = vsel %vm2751_vm12, 4294967295, %v3257_v59  ;;  %1781 = vmatpush1.bf16.msk.msra.mxu0 %vm2751_vm12, %v3177_v32  ;;  %1847 = vmatpush1.bf16.msk.msra.mxu1 %vm2751_vm12, %v3177_v32  ;;  %v761_v26 = vpop.permute.xlu1 %760  ;;  %vm1057_vm12 = vcmp.le.f32.partialorder %v993_v55, 1.0 }
 0x114   : >> { %v867_v38 = vsub.f32 %v761_v26, %v2413_v18  ;;  %v868_v39 = vsub.f32 %v761_v26, %v2410_v17  ;;  %v598_v26 = vsub.f32 %v484_v28, %v2408_v16 }
 0x115   : >> { %v489_v20 = vpop.permute.xlu0 %488 }
 0x116   : >> { %v931_v45 = vand.u32 2147483647, %v867_v38  ;;  %v932_v46 = vand.u32 2147483647, %v868_v39  ;;  %v600_v28 = vsub.f32 %v489_v20, %v2408_v16 }
 0x118   : >> { %v995_v56 = vmax.f32.f32 %v657_v41, %v931_v45  ;;  %v996_v61 = vmax.f32.f32 %v658_v44, %v932_v46  ;;  %v479_v24 = vpop.permute.xlu1 %478  ;;  %v661_v46 = vand.u32 2147483647, %v597_v21  ;;  %v599_v21 = vsub.f32 %v489_v20, %v2416_v19 }
 0x119   : >> { %v596_v48 = vsub.f32 %v479_v24, %v2408_v16  ;;  %v595_v27 = vsub.f32 %v479_v24, %v2416_v19  ;;  %v874_v24 = vsub.f32 %v2405_v15, %v2410_v17  ;;  %v3266_v20 = vmov 0 }
 0x11a   : >> { %vm1060_vm14 = vcmp.le.f32.partialorder %v996_v61, 1.0  ;;  %vm1059_vm2 = vcmp.le.f32.partialorder %v995_v56, 1.0  ;;  %v662_v56 = vand.u32 2147483647, %v598_v26  ;;  %v3263_v26 = vmov 0 }
 0x11b   : >> { %vm2763_vm4 = vmpackc.low %vm1060_vm14, %vm1058_vm13  ;;  %v660_v43 = vand.u32 2147483647, %v596_v48  ;;  %v659_v55 = vand.u32 2147483647, %v595_v27 }
 0x11c   : >> { %v3260_v25 = vsel %vm2763_vm4, 4294967295, %v3259_v25  ;;  %1783 = vmatprep.subr.msk.bf16.mxu0 %vm2763_vm4, %v3177_v32  ;;  %1849 = vmatprep.subr.msk.bf16.mxu1 %vm2763_vm4, %v3177_v32  ;;  %vm2773_vm8 = vmpackc.low %vm1059_vm2, %vm1057_vm12 }
 0x11d   : >> { %v3262_v13 = vsel %vm2773_vm8, 4294967295, %v3261_v13  ;;  %1785 = vmatpush1.bf16.msk.msra.mxu0 %vm2773_vm8, %v3177_v32  ;;  %1851 = vmatpush1.bf16.msk.msra.mxu1 %vm2773_vm8, %v3177_v32  ;;  %v765_v62 = vpop.permute.xlu1 %764  ;;  %v873_v32 = vsub.f32 %v2405_v15, %v2413_v18 }
 0x11e   : >> { %v869_v30 = vsub.f32 %v765_v62, %v2413_v18  ;;  %v870_v29 = vsub.f32 %v765_v62, %v2410_v17 }
 0x11f   : >> { %v937_v15 = vand.u32 2147483647, %v873_v32 }
 0x120   : >> { %v934_v38 = vand.u32 2147483647, %v870_v29  ;;  %v933_v39 = vand.u32 2147483647, %v869_v30 }
 0x121   : >> { %v769_v41 = vpop.permute.xlu1 %768 }
 0x122   : >> { %v871_v44 = vsub.f32 %v769_v41, %v2413_v18  ;;  %v872_v45 = vsub.f32 %v769_v41, %v2410_v17  ;;  %v998_v61 = vmax.f32.f32 %v660_v43, %v934_v38  ;;  %v997_v53 = vmax.f32.f32 %v659_v55, %v933_v39 }
 0x123   : >> { %v938_v38 = vand.u32 2147483647, %v874_v24  ;;  %v664_v39 = vand.u32 2147483647, %v600_v28  ;;  %v3265_v41 = vmov 1.0|1.0  }
 0x124   : >> { %v935_v47 = vand.u32 2147483647, %v871_v44  ;;  %v936_v62 = vand.u32 2147483647, %v872_v45  ;;  %vm1062_vm12 = vcmp.le.f32.partialorder %v998_v61, 1.0  ;;  %vm1061_vm8 = vcmp.le.f32.partialorder %v997_v53, 1.0 }
 0x125   : >> { %v663_v43 = vand.u32 2147483647, %v599_v21  ;;  %v1002_v55 = vmax.f32.f32 %v664_v39, %v938_v38  ;;  %v504_v21 = vpop.permute.xlu0 %503 }
 0x126   : >> { %v999_v30 = vmax.f32.f32 %v661_v46, %v935_v47  ;;  %v1000_v29 = vmax.f32.f32 %v662_v56, %v936_v62  ;;  %v494_v48 = vpop.permute.xlu1 %493 }
 0x127   : >> { %v601_v27 = vsub.f32 %v494_v48, %v2416_v19  ;;  %v602_v47 = vsub.f32 %v494_v48, %v2408_v16  ;;  %v1001_v32 = vmax.f32.f32 %v663_v43, %v937_v15  ;;  %v3270_v48 = vmov 0 }
 0x128   : >> { %vm1064_vm13 = vcmp.le.f32.partialorder %v1000_v29, 1.0  ;;  %vm1063_vm14 = vcmp.le.f32.partialorder %v999_v30, 1.0  ;;  %v3268_v29 = vmov 0  ;;  %v605_v15 = vsub.f32 %v504_v21, %v2416_v19 }
 0x129   : >> { %vm2798_vm2 = vmpackc.low %vm1064_vm13, %vm1062_vm12  ;;  %v665_v46 = vand.u32 2147483647, %v601_v27  ;;  %v666_v56 = vand.u32 2147483647, %v602_v47 }
 0x12a   : >> { %v3264_v26 = vsel %vm2798_vm2, 4294967295, %v3263_v26  ;;  %1787 = vmatprep.subr.msk.bf16.mxu0 %vm2798_vm2, %v3265_v41  ;;  %1853 = vmatprep.subr.msk.bf16.mxu1 %vm2798_vm2, %v3265_v41  ;;  %vm2809_vm4 = vmpackc.low %vm1063_vm14, %vm1061_vm8  ;;  %vm1066_vm8 = vcmp.le.f32.partialorder %v1002_v55, 1.0 }
 0x12b   : >> { %v3267_v20 = vsel %vm2809_vm4, 4294967295, %v3266_v20  ;;  %1789 = vmatpush1.bf16.msk.msra.mxu0 %vm2809_vm4, %v3265_v41  ;;  %1855 = vmatpush1.bf16.msk.msra.mxu1 %vm2809_vm4, %v3265_v41  ;;  %v777_v53 = vpop.permute.xlu1 %776  ;;  %vm1065_vm4 = vcmp.le.f32.partialorder %v1001_v32, 1.0  ;;  %v509_v32 = vpop.permute.xlu0 %508 }
 0x12c   : >> { %v875_v44 = vsub.f32 %v777_v53, %v2413_v18  ;;  %v876_v45 = vsub.f32 %v777_v53, %v2410_v17  ;;  %v606_v53 = vsub.f32 %v504_v21, %v2408_v16  ;;  %v608_v21 = vsub.f32 %v509_v32, %v2408_v16 }
 0x12e   : >> { %v939_v61 = vand.u32 2147483647, %v875_v44  ;;  %v940_v62 = vand.u32 2147483647, %v876_v45 }
 0x130   : >> { %v1003_v24 = vmax.f32.f32 %v665_v46, %v939_v61  ;;  %v1004_v28 = vmax.f32.f32 %v666_v56, %v940_v62  ;;  %v499_v30 = vpop.permute.xlu1 %498  ;;  %v669_v62 = vand.u32 2147483647, %v605_v15  ;;  %v607_v15 = vsub.f32 %v509_v32, %v2416_v19 }
 0x131   : >> { %v604_v38 = vsub.f32 %v499_v30, %v2408_v16  ;;  %v603_v43 = vsub.f32 %v499_v30, %v2416_v19  ;;  %v882_v30 = vsub.f32 %v2419_v22, %v2410_v17  ;;  %v945_v22 = vand.u32 2147483647, %v881_v7 }
 0x132   : >> { %vm1068_vm12 = vcmp.le.f32.partialorder %v1004_v28, 1.0  ;;  %vm1067_vm13 = vcmp.le.f32.partialorder %v1003_v24, 1.0  ;;  %v670_v28 = vand.u32 2147483647, %v606_v53  ;;  %v3272_v53 = vmov 0 }
 0x133   : >> { %vm2821_vm14 = vmpackc.low %vm1068_vm12, %vm1066_vm8  ;;  %v668_v55 = vand.u32 2147483647, %v604_v38  ;;  %v667_v24 = vand.u32 2147483647, %v603_v43 }
 0x134   : >> { %v3269_v29 = vsel %vm2821_vm14, 4294967295, %v3268_v29  ;;  %1791 = vmatprep.subr.msk.bf16.mxu0 %vm2821_vm14, %v3265_v41  ;;  %1857 = vmatprep.subr.msk.bf16.mxu1 %vm2821_vm14, %v3265_v41  ;;  %vm2831_vm2 = vmpackc.low %vm1067_vm13, %vm1065_vm4 }
 0x135   : >> { %v3271_v48 = vsel %vm2831_vm2, 4294967295, %v3270_v48  ;;  %1793 = vmatpush1.bf16.msk.msra.mxu0 %vm2831_vm2, %v3265_v41  ;;  %1859 = vmatpush1.bf16.msk.msra.mxu1 %vm2831_vm2, %v3265_v41  ;;  %v781_v27 = vpop.permute.xlu1 %780 }
 0x136   : >> { %v877_v39 = vsub.f32 %v781_v27, %v2413_v18  ;;  %v878_v47 = vsub.f32 %v781_v27, %v2410_v17 }
 0x138   : >> { %v942_v44 = vand.u32 2147483647, %v878_v47  ;;  %v941_v45 = vand.u32 2147483647, %v877_v39 }
 0x139   : >> { %v785_v46 = vpop.permute.xlu1 %784 }
 0x13a   : >> { %v879_v56 = vsub.f32 %v785_v46, %v2413_v18  ;;  %v880_v61 = vsub.f32 %v785_v46, %v2410_v17  ;;  %v1006_v4 = vmax.f32.f32 %v668_v55, %v942_v44  ;;  %v1005_v6 = vmax.f32.f32 %v667_v24, %v941_v45 }
 0x13b   : >> { %v946_v44 = vand.u32 2147483647, %v882_v30  ;;  %v672_v45 = vand.u32 2147483647, %v608_v21  ;;  %v671_v46 = vand.u32 2147483647, %v607_v15 }
 0x13c   : >> { %v943_v27 = vand.u32 2147483647, %v879_v56  ;;  %v944_v5 = vand.u32 2147483647, %v880_v61  ;;  %vm1070_vm4 = vcmp.le.f32.partialorder %v1006_v4, 1.0  ;;  %vm1069_vm2 = vcmp.le.f32.partialorder %v1005_v6, 1.0 }
 0x13d   : >> { %v3274_v4 = vmov 0  ;;  %v1009_v7 = vmax.f32.f32 %v671_v46, %v945_v22 }
 0x13e   : >> { %v1007_v39 = vmax.f32.f32 %v669_v62, %v943_v27  ;;  %v1008_v47 = vmax.f32.f32 %v670_v28, %v944_v5  ;;  %v514_v38 = vpop.permute.xlu1 %513  ;;  %v1010_v62 = vmax.f32.f32 %v672_v45, %v946_v44  ;;  %v524_v27 = vpop.permute.xlu0 %523 }
 0x13f   : >> { %v609_v43 = vsub.f32 %v514_v38, %v2416_v19  ;;  %v610_v5 = vsub.f32 %v514_v38, %v2408_v16  ;;  %v3278_v38 = vmov 0  ;;  %v613_v22 = vsub.f32 %v524_v27, %v2416_v19 }
 0x140   : >> { %vm1072_vm8 = vcmp.le.f32.partialorder %v1008_v47, 1.0  ;;  %vm1071_vm12 = vcmp.le.f32.partialorder %v1007_v39, 1.0  ;;  %v3276_v47 = vmov 0 }
 0x141   : >> { %vm2856_vm13 = vmpackc.low %vm1072_vm8, %vm1070_vm4  ;;  %v673_v61 = vand.u32 2147483647, %v609_v43  ;;  %v674_v32 = vand.u32 2147483647, %v610_v5 }
 0x142   : >> { %v3273_v53 = vsel %vm2856_vm13, 4294967295, %v3272_v53  ;;  %1795 = vmatprep.subr.msk.bf16.mxu0 %vm2856_vm13, %v3265_v41  ;;  %1861 = vmatprep.subr.msk.bf16.mxu1 %vm2856_vm13, %v3265_v41  ;;  %vm2867_vm14 = vmpackc.low %vm1071_vm12, %vm1069_vm2  ;;  %vm1074_vm2 = vcmp.le.f32.partialorder %v1010_v62, 1.0  ;;  %v529_v15 = vpop.permute.xlu0 %528 }
 0x143   : >> { %v3275_v4 = vsel %vm2867_vm14, 4294967295, %v3274_v4  ;;  %1797 = vmatpush1.bf16.msk.msra.mxu0 %vm2867_vm14, %v3265_v41  ;;  %1863 = vmatpush1.bf16.msk.msra.mxu1 %vm2867_vm14, %v3265_v41  ;;  %v793_v6 = vpop.permute.xlu1 %792  ;;  %vm1073_vm14 = vcmp.le.f32.partialorder %v1009_v7, 1.0 }
 0x144   : >> { %v883_v55 = vsub.f32 %v793_v6, %v2413_v18  ;;  %v884_v56 = vsub.f32 %v793_v6, %v2410_v17  ;;  %v614_v6 = vsub.f32 %v524_v27, %v2408_v16 }
 0x146   : >> { %v947_v24 = vand.u32 2147483647, %v883_v55  ;;  %v948_v28 = vand.u32 2147483647, %v884_v56  ;;  %v805_v7 = vpop.permute.xlu0 %804 }
 0x147   : >> { %v890_v27 = vsub.f32 %v805_v7, %v2410_v17  ;;  %v889_v49 = vsub.f32 %v805_v7, %v2413_v18 }
 0x148   : >> { %v1011_v30 = vmax.f32.f32 %v673_v61, %v947_v24  ;;  %v1012_v21 = vmax.f32.f32 %v674_v32, %v948_v28  ;;  %v519_v39 = vpop.permute.xlu1 %518  ;;  %v677_v28 = vand.u32 2147483647, %v613_v22 }
 0x149   : >> { %v612_v44 = vsub.f32 %v519_v39, %v2408_v16  ;;  %v611_v46 = vsub.f32 %v519_v39, %v2416_v19  ;;  %v616_v39 = vsub.f32 %v529_v15, %v2408_v16 }
 0x14a   : >> { %vm1076_vm4 = vcmp.le.f32.partialorder %v1012_v21, 1.0  ;;  %vm1075_vm8 = vcmp.le.f32.partialorder %v1011_v30, 1.0  ;;  %v678_v21 = vand.u32 2147483647, %v614_v6 }
 0x14b   : >> { %vm2879_vm12 = vmpackc.low %vm1076_vm4, %vm1074_vm2  ;;  %v676_v62 = vand.u32 2147483647, %v612_v44  ;;  %v675_v30 = vand.u32 2147483647, %v611_v46  ;;  %v615_v44 = vsub.f32 %v529_v15, %v2416_v19  ;;  %v3280_v46 = vmov 0 }
 0x14c   : >> { %v3277_v47 = vsel %vm2879_vm12, 4294967295, %v3276_v47  ;;  %1799 = vmatprep.subr.msk.bf16.mxu0 %vm2879_vm12, %v3265_v41  ;;  %1865 = vmatprep.subr.msk.bf16.mxu1 %vm2879_vm12, %v3265_v41  ;;  %vm2889_vm13 = vmpackc.low %vm1075_vm8, %vm1073_vm14  ;;  %v680_v6 = vand.u32 2147483647, %v616_v39 }
 0x14d   : >> { %v3279_v38 = vsel %vm2889_vm13, 4294967295, %v3278_v38  ;;  %1801 = vmatpush1.bf16.msk.msra.mxu0 %vm2889_vm13, %v3265_v41  ;;  %1867 = vmatpush1.bf16.msk.msra.mxu1 %vm2889_vm13, %v3265_v41  ;;  %v797_v43 = vpop.permute.xlu1 %796 }
 0x14e   : >> { %v885_v45 = vsub.f32 %v797_v43, %v2413_v18  ;;  %v886_v5 = vsub.f32 %v797_v43, %v2410_v17 }
 0x150   : >> { %v950_v55 = vand.u32 2147483647, %v886_v5  ;;  %v949_v56 = vand.u32 2147483647, %v885_v45 }
 0x151   : >> { %v801_v61 = vpop.permute.xlu1 %800 }
 0x152   : >> { %v887_v32 = vsub.f32 %v801_v61, %v2413_v18  ;;  %v888_v24 = vsub.f32 %v801_v61, %v2410_v17  ;;  %v1014_v8 = vmax.f32.f32 %v676_v62, %v950_v55  ;;  %v1013_v10 = vmax.f32.f32 %v675_v30, %v949_v56 }
 0x153   : >> { %v954_v55 = vand.u32 2147483647, %v890_v27 }
 0x154   : >> { %v951_v43 = vand.u32 2147483647, %v887_v32  ;;  %v952_v9 = vand.u32 2147483647, %v888_v24  ;;  %vm1078_vm14 = vcmp.le.f32.partialorder %v1014_v8, 1.0  ;;  %vm1077_vm13 = vcmp.le.f32.partialorder %v1013_v10, 1.0 }
 0x155   : >> { %v3282_v8 = vmov 0  ;;  %v1018_v61 = vmax.f32.f32 %v680_v6, %v954_v55  ;;  %v1230_v6 = vld [vmem:[%s1228_s22 + $0x8] sm:$0xff]  ;;  %v1231_v55 = vld [vmem:[%s1228_s22 + $0x10] sm:$0xff] }
 0x156   : >> { %v1015_v5 = vmax.f32.f32 %v677_v28, %v951_v43  ;;  %v1016_v45 = vmax.f32.f32 %v678_v21, %v952_v9  ;;  %v534_v11 = vpop.permute.xlu1 %533  ;;  %v679_v9 = vand.u32 2147483647, %v615_v44  ;;  %v3289_v21 = vmov 0  }
 0x157   : >> { %v617_v22 = vsub.f32 %v534_v11, %v2416_v19  ;;  %v618_v56 = vsub.f32 %v534_v11, %v2408_v16  ;;  %v953_v19 = vand.u32 2147483647, %v889_v49 }
 0x158   : >> { %vm1080_vm2 = vcmp.le.f32.partialorder %v1016_v45, 1.0  ;;  %vm1079_vm4 = vcmp.le.f32.partialorder %v1015_v5, 1.0 }
 0x159   : >> { %vm2912_vm8 = vmpackc.low %vm1080_vm2, %vm1078_vm14  ;;  %v681_v15 = vand.u32 2147483647, %v617_v22  ;;  %v682_v62 = vand.u32 2147483647, %v618_v56  ;;  %v1017_v28 = vmax.f32.f32 %v679_v9, %v953_v19  ;;  %v1229_v22 = vld [vmem:[%s1228_s22] sm:$0xff]  ;;  %v1232_v56 = vld [vmem:[%s1228_s22 + $0x18] sm:$0xff]  ;;  %v1235_v9 = vunpack.c.l.bf16 %v1230_v6 }
 0x15a   : >> { %v3281_v46 = vsel %vm2912_vm8, 4294967295, %v3280_v46  ;;  %1803 = vmatprep.subr.msk.bf16.mxu0 %vm2912_vm8, %v3265_v41  ;;  %1869 = vmatprep.subr.msk.bf16.mxu1 %vm2912_vm8, %v3265_v41  ;;  %vm2923_vm12 = vmpackc.low %vm1079_vm4, %vm1077_vm13  ;;  %vm1082_vm13 = vcmp.le.f32.partialorder %v1018_v61, 1.0  ;;  %v1233_v36 = vunpack.c.l.bf16 %v1229_v22  ;;  %s1635_s22 = sshll.u32 (%p334_p11), %s301_s15, 4  ;;  %s1636_s22 = int_to_ptr.vmem [resolvable:$true] %s1635_s22 }
 0x15b   : >> { %v3283_v8 = vsel %vm2923_vm12, 4294967295, %v3282_v8  ;;  %1805 = vmatpush1.bf16.msk.msra.mxu0 %vm2923_vm12, %v3265_v41  ;;  %1871 = vmatpush1.bf16.msk.msra.mxu1 %vm2923_vm12, %v3265_v41  ;;  %v809_v10 = vpop.permute.xlu1 %808  ;;  %vm1081_vm12 = vcmp.le.f32.partialorder %v1017_v28, 1.0  ;;  %s2051_s9 = scalar_lea.vmem (%p334_p11), %s1636_s22, 64  ;;  %p2058_p1 = scmp.lt.s32.totalorder (%p334_p11), %s1636_s22, %s2056_s13 }
 0x15c   : >> { %v891_v11 = vsub.f32 %v809_v10, %v2413_v18  ;;  %v892_v16 = vsub.f32 %v809_v10, %v2410_v17  ;;  %v3288_v18 = vmov 1065369472   ;;  %v1234_v10 = vunpack.c.h.bf16 %v1229_v22  ;;  %p2052_p12 = scmp.ne.s32.totalorder (%p334_p11), %s1636_s22, %s2051_s9  ;;  %p2059_p2 = scmp.lt.s32.totalorder (%p334_p11), %s2057_s23, %s2051_s9 }
 0x15e   : >> { %v955_v32 = vand.u32 2147483647, %v891_v11  ;;  %v956_v24 = vand.u32 2147483647, %v892_v16  ;;  %v1236_v11 = vunpack.c.h.bf16 %v1230_v6  ;;  %v1238_v16 = vunpack.c.h.bf16 %v1231_v55  ;;  %p2053_p13 = pnand (%p334_p11), %p2052_p12, %p2207_p5  ;;  %p2060_p3 = por (%p334_p11), %p2059_p2, %p2058_p1 }
 0x160   : >> { %v1019_v49 = vmax.f32.f32 %v681_v15, %v955_v32  ;;  %v1020_v7 = vmax.f32.f32 %v682_v62, %v956_v24  ;;  %v1240_v15 = vunpack.c.h.bf16 %v1232_v56  ;;  %v1325_v33 = vpop.permute.xlu1 %1324  ;;  %p2054_p0 = pneg (%p334_p11), %p2053_p13 }
 0x162   : >> { %vm1084_vm14 = vcmp.le.f32.partialorder %v1020_v7, 1.0  ;;  %vm1083_vm2 = vcmp.le.f32.partialorder %v1019_v49, 1.0  ;;  %p2061_p4 = pnand (%p334_p11), %p2060_p3, %p2054_p0 }
 0x163   : >> { %vm2935_vm4 = vmpackc.low %vm1084_vm14, %vm1082_vm13  ;;  %vm3301_vm13 = vnez %v3267_v20  ;;  %vm3302_vm14 = vnez %v3269_v29 }
 0x164   : >> { %1807 = vmatprep.subr.msk.bf16.mxu0 %vm2935_vm4, %v3265_v41  ;;  %1873 = vmatprep.subr.msk.bf16.mxu1 %vm2935_vm4, %v3265_v41  ;;  %vm2945_vm8 = vmpackc.low %vm1083_vm2, %vm1081_vm12  ;;  %vm3300_vm12 = vnez %v3264_v26  ;;  %vm3303_vm2 = vnez %v3271_v48 }
 0x165   : >> { %1809 = vmatpush1.bf16.msk.msra.mxu0 %vm2945_vm8, %v3265_v41  ;;  %1875 = vmatpush1.bf16.msk.msra.mxu1 %vm2945_vm8, %v3265_v41 }
 0x166   : >> { %1881 = vmatprep.subr.msk.bf16.mxu1 %vm2491_vm5, %v3265_v41  ;;  %vm3290_vm5 = vnez %v3242_v37  ;;  %v1330_v37 = vpop.permute.xlu0 %1329 }
 0x168   : >> { %1214 = vmatmul.mubr.bf16.vlgmr.msra.gmra.mrb[0].mxu0 %v3288_v18 }
 0x169   : >> { %1411 = vmatprep.mubr.bf16.mxu0 %v3289_v21 }
 0x23b   : >> { %v1215_v43 = vpop.f32.mrb[0].mxu0 }
 0x23c   : >> { %v1222_v39 = vmax.f32 %v1215_v43, 1.0  ;;  %v1217_v27 = vpop.f32.mrb[1].mxu0 }
 0x23d   : >> { %v1223_v5 = vmax.f32 %v1217_v27, 1.0  ;;  %v1219_v45 = vpop.f32.mrb[2].mxu0 }
 0x23e   : >> { %2047 = vrsqrt.f32 %v1222_v39  ;;  %v1220_v44 = vpop.f32.mrb[3].mxu0  ;;  %v1239_v45 = vunpack.c.l.bf16 %v1232_v56 }
 0x23f   : >> { %2049 = vrsqrt.f32 %v1223_v5  ;;  %v1237_v5 = vunpack.c.l.bf16 %v1231_v55 }
 0x248   : >> { %v2048_v19 = vpop.eup %2047 }
 0x249   : >> { %v2050_v61 = vpop.eup %2049  ;;  %v2963_v62 = vrot.slane %v2048_v19, %v2399_v58 }
 0x24a   : >> { %v2966_v32 = vrot.slane %v2050_v61, %v2399_v58  ;;  %v1877_v61 = vcombine.low %v2236_v2, %v2241_v3 }
 0x24b   : >> { %v1249_v24 = vmul.f32 %v2963_v62, %v1233_v36  ;;  %v1251_v28 = vmul.f32 %v2963_v62, %v1235_v9  ;;  %v1253_v58 = vmul.f32 %v2963_v62, %v1237_v5  ;;  %v1255_v22 = vmul.f32 %v2963_v62, %v1239_v45 }
 0x24c   : >> { %v1250_v49 = vmul.f32 %v2966_v32, %v1234_v10  ;;  %v1252_v7 = vmul.f32 %v2966_v32, %v1236_v11  ;;  %v1254_v18 = vmul.f32 %v2966_v32, %v1238_v16  ;;  %v1256_v43 = vmul.f32 %v2966_v32, %v1240_v15 }
 0x24d   : >> { %v1257_v27 = vpack.c.bf16 %v1251_v28, %v1249_v24  ;;  %v1259_v6 = vpack.c.bf16 %v1255_v22, %v1253_v58  ;;  %v1876_v15 = vcombine.low %v2222_v0, %v2227_v1 }
 0x24e   : >> { %v1258_v39 = vpack.c.bf16 %v1252_v7, %v1250_v49  ;;  %v1260_v44 = vpack.c.bf16 %v1256_v43, %v1254_v18 }
 0x250   : >> { %1293 = vmatprep.mubr.bf16.mxu1 %v1258_v39 }
 0x251   : >> { %1294 = vmatmul.mubr.bf16.vlgmr.msra.gmra.mrb[0].mxu1 %v1257_v27 }
 0x252   : >> { %1883 = vmatpush1.bf16.msk.msra.mxu1 %vm2505_vm7, %v3265_v41  ;;  %1303 = vmatprep.mubr.bf16.mxu1 %v1260_v44  ;;  %vm3291_vm7 = vnez %v3244_v60 }
 0x253   : >> { %1885 = vmatprep.subr.msk.bf16.mxu1 %vm2519_vm10, %v3265_v41  ;;  %vm3292_vm10 = vnez %v3248_v63 }
 0x256   : >> { %1887 = vmatpush1.bf16.msk.msra.mxu1 %vm2531_vm11, %v3265_v41  ;;  %vm3293_vm11 = vnez %v3250_v52 }
 0x257   : >> { %1889 = vmatprep.subr.msk.bf16.mxu1 %vm2561_vm0, %v3265_v41  ;;  %vm3294_vm0 = vnez %v3252_v14  ;;  %v1335_v14 = vpop.permute.xlu1 %1334 }
 0x259   : >> { %1304 = vmatmul.mubr.bf16.gmra.mrb[4].mxu1 %v1259_v6 }
 0x25a   : >> { %1891 = vmatpush1.bf16.msk.msra.mxu1 %vm2574_vm1, %v3265_v41  ;;  %vm3295_vm1 = vnez %v3254_v54 }
 0x25b   : >> { %1893 = vmatprep.subr.msk.bf16.mxu1 %vm2587_vm6, %v3265_v41  ;;  %vm3296_vm6 = vnez %v3256_v57 }
 0x25e   : >> { %1895 = vmatpush1.bf16.msk.msra.mxu1 %vm2596_vm9, %v3265_v41  ;;  %vm3297_vm9 = vnez %v3258_v59 }
 0x25f   : >> { %1897 = vmatprep.subr.msk.bf16.mxu1 %vm2618_vm15, %v3265_v41  ;;  %vm3298_vm15 = vnez %v3260_v25 }
 0x262   : >> { %1899 = vmatpush1.bf16.msk.msra.mxu1 %vm2630_vm3, %v3265_v41  ;;  %vm3299_vm3 = vnez %v3262_v13 }
 0x263   : >> { %1901 = vmatprep.subr.msk.bf16.mxu1 %vm3290_vm5, %v3265_v41  ;;  %vm3304_vm5 = vnez %v3273_v53 }
 0x266   : >> { %1903 = vmatpush1.bf16.msk.msra.mxu1 %vm3291_vm7, %v3265_v41  ;;  %vm3305_vm7 = vnez %v3275_v4 }
 0x267   : >> { %1905 = vmatprep.subr.msk.bf16.mxu1 %vm3292_vm10, %v3265_v41  ;;  %vm3306_vm10 = vnez %v3277_v47 }
 0x26a   : >> { %1907 = vmatpush1.bf16.msk.msra.mxu1 %vm3293_vm11, %v3265_v41  ;;  %vm3307_vm11 = vnez %v3279_v38 }
 0x26b   : >> { %1909 = vmatprep.subr.msk.bf16.mxu1 %vm3294_vm0, %v3265_v41  ;;  %vm3308_vm0 = vnez %v3281_v46 }
 0x26e   : >> { %1911 = vmatpush1.bf16.msk.msra.mxu1 %vm3295_vm1, %v3265_v41  ;;  %vm3309_vm1 = vnez %v3283_v8  ;;  %v1340_v8 = vpop.permute.xlu1 %1339 }
 0x26f   : >> { %1913 = vmatprep.subr.msk.bf16.mxu1 %vm3296_vm6, %v3265_v41 }
 0x272   : >> { %1915 = vmatpush1.bf16.msk.msra.mxu1 %vm3297_vm9, %v3265_v41 }
 0x273   : >> { %1917 = vmatprep.subr.msk.bf16.mxu1 %vm3298_vm15, %v3265_v41 }
 0x276   : >> { %1919 = vmatpush1.bf16.msk.msra.mxu1 %vm3299_vm3, %v3265_v41 }
 0x277   : >> { %1921 = vmatprep.subr.msk.bf16.mxu1 %vm3300_vm12, %v3265_v41 }
 0x27a   : >> { %1923 = vmatpush1.bf16.msk.msra.mxu1 %vm3301_vm13, %v3265_v41 }
 0x27b   : >> { %1925 = vmatprep.subr.msk.bf16.mxu1 %vm3302_vm14, %v3265_v41 }
 0x27e   : >> { %1927 = vmatpush1.bf16.msk.msra.mxu1 %vm3303_vm2, %v3265_v41 }
 0x27f   : >> { %1929 = vmatprep.subr.msk.bf16.mxu1 %vm3304_vm5, %v3265_v41 }
 0x282   : >> { %1931 = vmatpush1.bf16.msk.msra.mxu1 %vm3305_vm7, %v3265_v41 }
 0x283   : >> { %1933 = vmatprep.subr.msk.bf16.mxu1 %vm3306_vm10, %v3265_v41 }
 0x286   : >> { %1935 = vmatpush1.bf16.msk.msra.mxu1 %vm3307_vm11, %v3265_v41 }
 0x287   : >> { %1937 = vmatprep.subr.msk.bf16.mxu1 %vm3308_vm0, %v3265_v41 }
 0x28a   : >> { %1939 = vmatpush1.bf16.msk.msra.mxu1 %vm3309_vm1, %v3265_v41 }
 0x28b   : >> { %1941 = vmatprep.subr.msk.bf16.mxu1 %vm2935_vm4, %v3265_v41 }
 0x28e   : >> { %1943 = vmatpush1.bf16.msk.msra.mxu1 %vm2945_vm8, %v3265_v41  ;;  %vm1372_vm8 = vcmask 261120  }
 0x324   : >> { %v1295_v42 = vpop.f32.mrb[0].mxu1 }
 0x325   : >> { %v1314_v35 = vmul.f32 %v1295_v42, %v2963_v62  ;;  %v1297_v51 = vpop.f32.mrb[1].mxu1 }
 0x326   : >> { %v1315_v34 = vmul.f32 %v1297_v51, %v2966_v32  ;;  %v1299_v40 = vpop.f32.mrb[2].mxu1 }
 0x327   : >> { %v1342_v50 = vadd.f32 %v1325_v33, %v1314_v35  ;;  %v1316_v23 = vmul.f32 %v1299_v40, %v2963_v62  ;;  %v1301_v31 = vpop.f32.mrb[3].mxu1 }
 0x328   : >> { %v1343_v60 = vadd.f32 %v1325_v33, %v1315_v34  ;;  %v1317_v63 = vmul.f32 %v1301_v31, %v2966_v32  ;;  %v1508_v31 = vpop.permute.xlu0 %1507 }
 0x329   : >> { %v1344_v52 = vadd.f32 %v1330_v37, %v1316_v23  ;;  %v1350_v57 = vmax.f32 %v1342_v50, 0.0 }
 0x32a   : >> { %v1345_v54 = vadd.f32 %v1330_v37, %v1317_v63  ;;  %v1351_v25 = vmax.f32 %v1343_v60, 0.0 }
 0x32b   : >> { %v1352_v59 = vmax.f32 %v1344_v52, 0.0 }
 0x32c   : >> { %v1353_v13 = vmax.f32 %v1345_v54, 0.0  ;;  %v1305_v26 = vpop.f32.mrb[4].mxu1  ;;  %v1513_v54 = vpop.permute.xlu1 %1512 }
 0x32d   : >> { %v1358_v41 = vpack.c.bf16 %v1352_v59, %v1350_v57  ;;  %v1318_v20 = vmul.f32 %v1305_v26, %v2963_v62  ;;  %v1307_v29 = vpop.f32.mrb[5].mxu1 }
 0x32e   : >> { %v1319_v48 = vmul.f32 %v1307_v29, %v2966_v32  ;;  %v1309_v53 = vpop.f32.mrb[6].mxu1  ;;  %v1359_v4 = vpack.c.bf16 %v1353_v13, %v1351_v25 }
 0x32f   : >> { %v1346_v47 = vadd.f32 %v1335_v14, %v1318_v20  ;;  %v1320_v38 = vmul.f32 %v1309_v53, %v2963_v62  ;;  %v1311_v46 = vpop.f32.mrb[7].mxu1 }
 0x330   : >> { %v1347_v30 = vadd.f32 %v1335_v14, %v1319_v48  ;;  %v1321_v17 = vmul.f32 %v1311_v46, %v2966_v32  ;;  %1379 = vmatprep.subr.bf16.mxu0 %v1359_v4 }
 0x331   : >> { %v1348_v55 = vadd.f32 %v1340_v8, %v1320_v38  ;;  %1380 = vmatpush1.bf16.msra.mxu0 %v1358_v41  ;;  %v1354_v36 = vmax.f32 %v1346_v47, 0.0  ;;  %v1518_v38 = vpop.permute.xlu0 %1517 }
 0x332   : >> { %v1349_v56 = vadd.f32 %v1340_v8, %v1321_v17  ;;  %v1355_v19 = vmax.f32 %v1347_v30, 0.0 }
 0x333   : >> { %v1356_v9 = vmax.f32 %v1348_v55, 0.0 }
 0x334   : >> { %v1357_v10 = vmax.f32 %v1349_v56, 0.0 }
 0x335   : >> { %v1360_v11 = vpack.c.bf16 %v1356_v9, %v1354_v36  ;;  %v1523_v36 = vpop.permute.xlu1 %1522 }
 0x336   : >> { %v1361_v16 = vpack.c.bf16 %v1357_v10, %v1355_v19 }
 0x338   : >> { %1381 = vmatprep.subr.bf16.mxu0 %v1361_v16 }
 0x339   : >> { %1382 = vmatpush1.bf16.msra.mxu0 %v1360_v11 }
 0x33c   : >> { %1878 = vmatmul.mubr.msk.bf16.vlgmr.msra.gmra.mrb[4].mxu0 %vm1372_vm8, %v1876_v15 }
 0x33d   : >> { %1421 = vmatprep.mubr.bf16.mxu0 %v3289_v21 }
 0x344   : >> { %1879 = vmatmul.mubr.msk.bf16.gmra.mrb[8].mxu0 %vm1372_vm8, %v1877_v61 }
 0x345   : >> { %1580 = vmatprep.mubr.bf16.mxu0 %v3289_v21 }
 0x40f   : >> { %v1413_v24 = vpop.f32.mrb[4].mxu0 }
 0x410   : >> { %v1415_v28 = vpop.f32.mrb[5].mxu0  ;;  %v1432_v7 = vmul.f32 %v1413_v24, %v2963_v62 }
 0x411   : >> { %v1417_v49 = vpop.f32.mrb[6].mxu0  ;;  %v1433_v39 = vmul.f32 %v1415_v28, %v2966_v32 }
 0x412   : >> { %v1434_v18 = vmul.f32 %v1417_v49, %v2963_v62  ;;  %v1419_v43 = vpop.f32.mrb[7].mxu0 }
 0x413   : >> { %v1435_v27 = vmul.f32 %v1419_v43, %v2966_v32  ;;  %v3310_v43 = vld [vmem:[#allocation13_spill] sm:$0xff] }
 0x414   : >> { %v1440_v5 = vpack.c.bf16 %v1434_v18, %v1432_v7 }
 0x415   : >> { %v1441_v45 = vpack.c.bf16 %v1435_v27, %v1433_v39 }
 0x417   : >> { %v1423_v44 = vpop.f32.mrb[8].mxu0  ;;  %1476 = vmatprep.mubr.bf16.mxu1 %v1441_v45 }
 0x418   : >> { %v1425_v58 = vpop.f32.mrb[9].mxu0  ;;  %1477 = vmatmul.mubr.bf16.vlgmr.msra.gmra.mrb[8].mxu1 %v1440_v5  ;;  %v1436_v21 = vmul.f32 %v1423_v44, %v2963_v62 }
 0x419   : >> { %v1427_v22 = vpop.f32.mrb[10].mxu0  ;;  %v1437_v42 = vmul.f32 %v1425_v58, %v2966_v32 }
 0x41a   : >> { %v1438_v6 = vmul.f32 %v1427_v22, %v2963_v62  ;;  %v1429_v33 = vpop.f32.mrb[11].mxu0  ;;  %v3311_v22 = vlaneseq }
 0x41b   : >> { %v1439_v35 = vmul.f32 %v1429_v33, %v2966_v32 }
 0x41c   : >> { %v1442_v51 = vpack.c.bf16 %v1438_v6, %v1436_v21  ;;  %vm1609_vm4 = vcmp.lt.s32.totalorder %v3311_v22, 256 }
 0x41d   : >> { %v1443_v34 = vpack.c.bf16 %v1439_v35, %v1437_v42 }
 0x41f   : >> { %1486 = vmatprep.mubr.bf16.mxu1 %v1443_v34 }
 0x420   : >> { %1487 = vmatmul.mubr.bf16.gmra.mrb[12].mxu1 %v1442_v51 }
 0x4eb   : >> { %v1478_v40 = vpop.f32.mrb[8].mxu1 }
 0x4ec   : >> { %v1497_v50 = vmul.f32 %v1478_v40, %v2963_v62  ;;  %v1480_v23 = vpop.f32.mrb[9].mxu1 }
 0x4ed   : >> { %v1498_v37 = vmul.f32 %v1480_v23, %v2966_v32  ;;  %v1482_v60 = vpop.f32.mrb[10].mxu1 }
 0x4ee   : >> { %v1525_v63 = vadd.f32 %v1508_v31, %v1497_v50  ;;  %v1499_v52 = vmul.f32 %v1482_v60, %v2963_v62  ;;  %v1484_v14 = vpop.f32.mrb[11].mxu1 }
 0x4ef   : >> { %v1526_v57 = vadd.f32 %v1508_v31, %v1498_v37  ;;  %v1500_v59 = vmul.f32 %v1484_v14, %v2966_v32 }
 0x4f0   : >> { %v1527_v25 = vadd.f32 %v1513_v54, %v1499_v52  ;;  %v1533_v26 = vmax.f32 %v1525_v63, 0.0 }
 0x4f1   : >> { %v1528_v13 = vadd.f32 %v1513_v54, %v1500_v59  ;;  %v1534_v20 = vmax.f32 %v1526_v57, 0.0 }
 0x4f2   : >> { %v1535_v41 = vmax.f32 %v1527_v25, 0.0 }
 0x4f3   : >> { %v1536_v29 = vmax.f32 %v1528_v13, 0.0  ;;  %v1488_v48 = vpop.f32.mrb[12].mxu1 }
 0x4f4   : >> { %v1541_v53 = vpack.c.bf16 %v1535_v41, %v1533_v26  ;;  %v1501_v4 = vmul.f32 %v1488_v48, %v2963_v62  ;;  %v1490_v47 = vpop.f32.mrb[13].mxu1 }
 0x4f5   : >> { %v1502_v46 = vmul.f32 %v1490_v47, %v2966_v32  ;;  %v1492_v8 = vpop.f32.mrb[14].mxu1  ;;  %v1542_v30 = vpack.c.bf16 %v1536_v29, %v1534_v20 }
 0x4f6   : >> { %v1529_v17 = vadd.f32 %v1518_v38, %v1501_v4  ;;  %v1503_v55 = vmul.f32 %v1492_v8, %v2963_v62  ;;  %v1494_v56 = vpop.f32.mrb[15].mxu1  ;;  %v2127_v62 = vmov 1966171168  }
 0x4f7   : >> { %v1530_v9 = vadd.f32 %v1518_v38, %v1502_v46  ;;  %v1504_v19 = vmul.f32 %v1494_v56, %v2966_v32  ;;  %1548 = vmatprep.subr.bf16.mxu0 %v1542_v30  ;;  %v1593_v32 = vunpack.c.l.s4 %v2127_v62 }
 0x4f8   : >> { %v1531_v10 = vadd.f32 %v1523_v36, %v1503_v55  ;;  %1549 = vmatpush1.bf16.msra.mxu0 %v1541_v53  ;;  %v1537_v16 = vmax.f32 %v1529_v17, 0.0 }
 0x4f9   : >> { %v1532_v11 = vadd.f32 %v1523_v36, %v1504_v19  ;;  %v1538_v61 = vmax.f32 %v1530_v9, 0.0  ;;  %v1594_v7 = vunpack.c.0.s8 %v1593_v32 }
 0x4fa   : >> { %v1539_v15 = vmax.f32 %v1531_v10, 0.0 }
 0x4fb   : >> { %v1540_v24 = vmax.f32 %v1532_v11, 0.0  ;;  %v1597_v39 = vsub.s32 %v1594_v7, %v3310_v43 }
 0x4fc   : >> { %v1543_v28 = vpack.c.bf16 %v1539_v15, %v1537_v16 }
 0x4fd   : >> { %v1544_v49 = vpack.c.bf16 %v1540_v24, %v1538_v61 }
 0x4ff   : >> { %1550 = vmatprep.subr.bf16.mxu0 %v1544_v49 }
 0x500   : >> { %1551 = vmatpush1.bf16.msra.mxu0 %v1543_v28 }
 0x503   : >> { %1944 = vmatmul.mubr.msk.bf16.vlgmr.msra.gmra.mrb[12].mxu0 %vm1372_vm8, %v2287_v12 }
 0x5d6   : >> { %v1582_v18 = vpop.f32.mrb[12].mxu0 }
 0x5d7   : >> { %v1584_v27 = vpop.f32.mrb[13].mxu0 }
 0x5d8   : >> { %v1591_v5 = vcombine.low %v1582_v18, %v1584_v27  ;;  %v1586_v45 = vpop.f32.mrb[14].mxu0  ;;  %336 = sbr.rel (!%p334_p11) target bundleno = 35 (0x23), region = 100 }
 0x5d9   : >> { %v1587_v44 = vpop.f32.mrb[15].mxu0 }
 0x5da   : >> { %v1598_v58 = vrot.slane %v1591_v5, %v1597_v39 }
 0x5dc   : >> { %v1605_v21 = vrot.slane %v1598_v58, %v1597_v39 }
 0x5de   : >> { %1619 = vst.msk [vmem:[%s1618_s19] ss:$2 sm:$0x3] %vm1609_vm4, %v1605_v21 }
 0x5df   : > { %2064 = shalt.err (!%p2061_p4)
}
 0x5e0   : > { %s2065_s28 = scalar_lea.hbm %s3116_s21, 64  ;;  %s2069_s16 = scalar_lea.hbm %s3163_s7, 128 }
 0x5e1   : > { %p2066_p7 = scmp.ne.s32.totalorder %s3116_s21, %s2065_s28  ;;  %p2070_p10 = scmp.lt.u32.totalorder %s3116_s21, %s3163_s7 }
 0x5e2   : > { %p2071_p11 = scmp.lt.u32.totalorder %s2069_s16, %s2065_s28  ;;  %p2073_p13 = scmp.lt.u32.totalorder %s2065_s28, %s3116_s21 }
 0x5e3   : > { %p2067_p8 = pnand %p2066_p7, %p2207_p5 }
 0x5e4   : > { %p2072_p12 = por %p2071_p11, %p2070_p10 }
 0x5e5   : > { %p2068_p9 = pneg %p2067_p8 }
 0x5e6   : > { %p2074_p0 = por %p2073_p13, %p2072_p12 }
 0x5e8   : > { %p2075_p1 = pnand %p2074_p0, %p2068_p9 }
 0x5ea   : > { %2078 = shalt.err (!%p2075_p1)
}
 0x5eb   : > { %1959 = dma.vmem_to_hbm [thread:$0]  (%p2207_p5), %s1636_s22, 64, %s3116_s21, %s1621_s8  }
 0x5ec PF: > { %p1965_p2 = scmp.ge.s32.totalorder %s2117_s27, 2  ;;  %s1647_s17 = sand.u32 1, %s2105_s24  }
 0x5ed   : > { %s1648_s3 = scalar_lea.sflag [#allocation3], %s1647_s17 }
 0x5ee   : > { %p1962_p3 = pnand %p1965_p2, %p2211_p6 }
 0x5f0   : > { %2100 = dma.done.wait (!%p1962_p3), %s1648_s3, 64  }
 0x5f1   : > { %2102 = vsyncadd (!%p1962_p3), %s1648_s3, 4294967232  ;;  %p17_p4 = scmp.ge.s32.totalorder %s2194_s30, 4   ;;  %s3313_s24 = smov %s2109_s25 }
 0x5f2   : > { %s3314_s25 = smov %s2113_s26  ;;  %s3315_s26 = smov %s2205_s10 }
 0x5f3   : > { %s3316_s27 = smov %s2194_s30  ;;  %19 = sbr.rel (!%p17_p4) target bundleno = 6 (0x6), region = 111 }
 0x5fa   :  { %1653 = vsyncpa [#allocation3], 1 }
 0x5fb   :  { %1655 = vsyncpa [#allocation3 + $0x1], 1 }

</bundles_post_ra>
